<compile_context>
chip_gen: v6e
topology: v6e:2x2x1
jax: 0.10.0
libtpu: 0.0.40
codegen_flags: <defaults>
</compile_context>

<pallas_src>
import numpy as np
import jax
import jax.numpy as jnp
from jax.experimental import pallas as pl
from jax.experimental.pallas import tpu as pltpu

# ---------------------------------------------------------------------------------
# Tiling / dtype configuration (per TPU generation)
# ---------------------------------------------------------------------------------
ROW_ALIGN = 16           # row counts padded to multiples of 16
FEAT_ALIGN = 8           # tiny encoder feature dims padded to 8 (aligned sublane loads)
OUT_LANE = 128           # decoder output padded to 128 lanes (lane-dense vst)
W_DTYPE = jnp.bfloat16   # stored weights (GNN W1/W2, encoder W2, decoder)


def _default_tn_max():
    try:
        kind = jax.devices()[0].device_kind.lower()
    except Exception:
        return 1024
    # v5e/v6e: 128 MiB VMEM, 1 TensorCore -> large tiles amortize ~0.35us/step overhead.
    # v7x (and unknown): 64 MiB VMEM, 2 TensorCores -> smaller tiles, need >=2 grid steps.
    return 2048 if ("v5" in kind or "v6" in kind) else 1024


TN_MAX = _default_tn_max()
VMEM_LIMIT_BYTES = (64 if TN_MAX >= 2048 else 32) * 1024 * 1024


def _round_up(x, m):
    return ((x + m - 1) // m) * m


def _tile_and_pad(n):
    """Row tile + padded row count.  Aims for >=2 grid steps (v7x megacore) up to TN_MAX."""
    n_min = _round_up(max(n, ROW_ALIGN), ROW_ALIGN)
    if n_min <= 2 * ROW_ALIGN:
        tile = n_min                                   # too small to split across cores
    else:
        tile = min(TN_MAX, _round_up(-(-n_min // 2), ROW_ALIGN))
    return tile, _round_up(n_min, tile)


def _pad_rows(x, n_pad):
    n = x.shape[0]
    if n == n_pad:
        return x
    return jnp.pad(x, [(0, n_pad - n)] + [(0, 0)] * (x.ndim - 1))


def _pad_rows_to(x, m):
    return _pad_rows(x, _round_up(x.shape[0], m))


def _pad_cols_to(x, m):
    d = x.shape[-1]
    d_pad = _round_up(d, m)
    if d_pad == d:
        return x
    return jnp.pad(x, [(0, 0)] * (x.ndim - 1) + [(0, d_pad - d)])


# ---------------------------------------------------------------------------------
# Fused Pallas kernel:
#   out = relu(concat(gathered..., xs...) @ W1 + b1) @ W2 + b2 [+ residual] [* row-mask]
# Covers encoders / decoder (1 input), GNN edge update (2 in-kernel gathers + edge_h +
# residual + pad-row mask) and GNN node update (node_h + agg + residual).
# ---------------------------------------------------------------------------------
def _gather_rows(src, idx_col, impl):
    """Gather rows of src [M,H] at idx_col [T,1] int32 -> [T,H], inside the kernel."""
    if impl == "take":
        return jnp.take(src, idx_col[:, 0], axis=0, mode="clip")
    # "take_along": indices broadcast to the result shape (dynamic_gather-friendly form)
    idx_full = jnp.broadcast_to(idx_col, (idx_col.shape[0], src.shape[1]))
    return jnp.take_along_axis(src, idx_full, axis=0, mode="clip")


def _make_fused_kernel(n_gather, n_plain, gather_impl, residual_idx,
                       n_valid, n_rows_pad, tile):
    apply_mask = (n_valid is not None) and (n_valid < n_rows_pad)

    def kernel(*refs):
        pos = 0
        src_ref = None
        if n_gather:
            src_ref = refs[pos]
            pos += 1
        idx_refs = refs[pos:pos + n_gather]; pos += n_gather
        x_refs = refs[pos:pos + n_plain]; pos += n_plain
        w1_ref, b1_ref, w2_ref, b2_ref = refs[pos:pos + 4]; pos += 4
        o_ref = refs[pos]

        vals = []
        if n_gather:
            src = src_ref[...]                                   # resident node_h block
            for idx_ref in idx_refs:
                vals.append(_gather_rows(src, idx_ref[...], gather_impl))
        for x_ref in x_refs:
            vals.append(x_ref[...])

        # First layer: cast to the weight dtype IN-KERNEL and issue one lane-concatenated
        # K=(sum d_k) dot (single MXU pass; f32 accumulate).
        blocks = [v.astype(w1_ref.dtype) for v in vals]
        xcat = blocks[0] if len(blocks) == 1 else jnp.concatenate(blocks, axis=-1)
        h = jnp.dot(xcat, w1_ref[...], preferred_element_type=jnp.float32)
        h = jnp.maximum(h + b1_ref[...].astype(jnp.float32), 0.0)

        # Second layer + f32 epilogue (bias, fused residual, fused pad-row mask).
        out = jnp.dot(h.astype(w2_ref.dtype), w2_ref[...],
                      preferred_element_type=jnp.float32)
        out = out + b2_ref[...].astype(jnp.float32)
        if residual_idx is not None:
            out = out + vals[residual_idx].astype(jnp.float32)
        if apply_mask:
            row = pl.program_id(0) * tile + jax.lax.broadcasted_iota(
                jnp.int32, (tile, 1), 0)
            out = jnp.where(row < n_valid, out, 0.0)
        o_ref[...] = out.astype(o_ref.dtype)

    return kernel


def fused_mlp(xs, w1, b1, w2, b2, *, tile, gather_src=None, gather_idx=(),
              gather_impl="take", residual_idx=None, n_valid=None,
              out_dtype=jnp.float32):
    """Fused 2-layer MLP over row tiles.

    xs:           list of [N_pad, d_k] row-tiled inputs (f32; cast in-kernel).
    gather_src:   optional resident [M_pad, H] array; each index array in gather_idx
                  ([N_pad,1] int32, row-tiled) yields an in-kernel gathered [tile, H]
                  input placed BEFORE xs in the concat order.
    w1: [sum d_k, H];  b1: [1, H];  w2: [H, D];  b2: [1, D].
    residual_idx: index into (gathered + xs) whose value is added to the output.
    n_valid:      if set, rows >= n_valid are zeroed in-kernel (pad-row mask).
    """
    n_gather = len(gather_idx)
    n_rows = (gather_idx[0] if n_gather else xs[0]).shape[0]
    assert n_rows % tile == 0, "rows must be pre-padded to a multiple of the tile"
    h_dim, d_out = w2.shape

    in_specs, args = [], []
    if n_gather:
        in_specs.append(pl.BlockSpec(gather_src.shape, lambda i: (0, 0)))
        args.append(gather_src)
        for idx in gather_idx:
            in_specs.append(pl.BlockSpec((tile, 1), lambda i: (i, 0)))
            args.append(idx)
    for x in xs:
        in_specs.append(pl.BlockSpec((tile, x.shape[1]), lambda i: (i, 0)))
        args.append(x)
    in_specs += [pl.BlockSpec(w1.shape, lambda i: (0, 0)),
                 pl.BlockSpec((1, h_dim), lambda i: (0, 0)),
                 pl.BlockSpec(w2.shape, lambda i: (0, 0)),
                 pl.BlockSpec((1, d_out), lambda i: (0, 0))]
    args += [w1, b1, w2, b2]

    return pl.pallas_call(
        _make_fused_kernel(n_gather, len(xs), gather_impl, residual_idx,
                           n_valid, n_rows, tile),
        out_shape=jax.ShapeDtypeStruct((n_rows, d_out), out_dtype),
        grid=(n_rows // tile,),
        in_specs=in_specs,
        out_specs=pl.BlockSpec((tile, d_out), lambda i: (i, 0)),
        compiler_params=pltpu.CompilerParams(
            dimension_semantics=("parallel",),
            vmem_limit_bytes=VMEM_LIMIT_BYTES),
    )(*args)


def probe_in_kernel_gather(n_node_pad, n_edge_pad, edge_tile, h_dim, n_edges):
    """Compile the exact fused edge-update configuration once and pick an in-kernel
    gather implementation that lowers on this build; None -> fall back to XLA gathers."""
    node_h = jnp.zeros((n_node_pad, h_dim), jnp.float32)
    edge_h = jnp.zeros((n_edge_pad, h_dim), jnp.float32)
    idx = jnp.zeros((n_edge_pad, 1), jnp.int32)
    w1 = jnp.zeros((3 * h_dim, h_dim), W_DTYPE)
    b1 = jnp.zeros((1, h_dim), jnp.float32)
    w2 = jnp.zeros((h_dim, h_dim), W_DTYPE)
    b2 = jnp.zeros((1, h_dim), jnp.float32)
    for impl in ("take", "take_along"):
        try:
            out = fused_mlp([edge_h], w1, b1, w2, b2, tile=edge_tile,
                            gather_src=node_h, gather_idx=(idx, idx),
                            gather_impl=impl, residual_idx=2, n_valid=n_edges)
            jax.block_until_ready(out)
            return impl
        except Exception:
            continue
    return None


# ---------------------------------------------------------------------------------
# Mesh / graph glue (host-side numpy, hoisted out of the jitted forward)
# ---------------------------------------------------------------------------------
def triangles_to_edges(cells):
    edges = np.concatenate(
        [cells[:, [0, 1]], cells[:, [1, 2]], cells[:, [2, 0]]], axis=0)
    edges = np.sort(edges, axis=1)
    edges = np.unique(edges, axis=0)
    senders = np.concatenate([edges[:, 0], edges[:, 1]]).astype(np.int32)
    receivers = np.concatenate([edges[:, 1], edges[:, 0]]).astype(np.int32)
    return senders, receivers


def build_mesh_edges(pos, cells):
    senders, receivers = triangles_to_edges(np.asarray(cells))
    rel = np.asarray(pos)[senders] - np.asarray(pos)[receivers]
    edge_features = np.hstack(
        (rel, np.linalg.norm(rel, axis=1, keepdims=True))).astype(np.float32)
    return senders, receivers, edge_features


# ---------------------------------------------------------------------------------
# Normalizer (accumulating running stats, functional state threaded through forward)
# ---------------------------------------------------------------------------------
_STD_EPS = 1e-8


def normalizer_init(size):
    return {"count": jnp.zeros((), jnp.float32),
            "sum": jnp.zeros((size,), jnp.float32),
            "sum_sq": jnp.zeros((size,), jnp.float32)}


def normalizer_accumulate(state, data):
    return {"count": state["count"] + data.shape[0],
            "sum": state["sum"] + jnp.sum(data, axis=0),
            "sum_sq": state["sum_sq"] + jnp.sum(data * data, axis=0)}


def _normalizer_stats(state):
    safe = jnp.maximum(state["count"], 1.0)
    mean = state["sum"] / safe
    var = jnp.maximum(state["sum_sq"] / safe - mean * mean, 0.0)
    std = jnp.maximum(jnp.sqrt(var), _STD_EPS)
    return mean, std


def normalizer_normalize(state, data):
    mean, std = _normalizer_stats(state)
    return (data - mean) / std


def normalizer_inverse(state, data):
    mean, std = _normalizer_stats(state)
    return data * std + mean


def fold_normalizer_into_first_layer(state, w1, b1):
    """(x - mean)/std @ W1 + b1  ==  x @ (W1/std[:,None]) + (b1 - (mean/std) @ W1)."""
    mean, std = _normalizer_stats(state)
    w1f = w1 / std[:, None]
    b1f = (b1 - (mean / std) @ w1).reshape(1, -1)
    return w1f, b1f


# ---------------------------------------------------------------------------------
# Parameters (raw f32 init, then one-time "prepare" pass: pad / cast)
# ---------------------------------------------------------------------------------
def _init_linear(key, fan_in, fan_out):
    kw, kb = jax.random.split(key)
    bound = 1.0 / np.sqrt(fan_in)
    w = jax.random.uniform(kw, (fan_in, fan_out), jnp.float32, -bound, bound)
    b = jax.random.uniform(kb, (fan_out,), jnp.float32, -bound, bound)
    return w, b


def _init_mlp2(key, d_in, h, d_out):
    k1, k2 = jax.random.split(key)
    w1, b1 = _init_linear(k1, d_in, h)
    w2, b2 = _init_linear(k2, h, d_out)
    return (w1, b1, w2, b2)


def init_params(key, z_dim, edge_dim, h_dim, n_blocks):
    keys = jax.random.split(key, 3 + 2 * n_blocks)
    params = {
        "encoder_node": _init_mlp2(keys[0], z_dim, h_dim, h_dim),
        "encoder_edge": _init_mlp2(keys[1], edge_dim, h_dim, h_dim),
        "decoder": _init_mlp2(keys[2], h_dim, h_dim, z_dim),
        "gnn": [],
    }
    for b in range(n_blocks):
        params["gnn"].append({
            "edge": _init_mlp2(keys[3 + 2 * b], 3 * h_dim, h_dim, h_dim),
            "node": _init_mlp2(keys[4 + 2 * b], 2 * h_dim, h_dim, h_dim),
        })
    return params


def prepare_params(raw):
    """One-time prep: cast stored weights to bf16 (GNN W1 kept whole for a single
    K=384/256 dot), pad decoder output columns to 128 lanes, reshape biases to (1,D)."""
    def prep_encoder(p):
        w1, b1, w2, b2 = p
        # first layer stays f32: folded with normalizer stats at runtime, K is tiny
        return {"w1": w1, "b1": b1,
                "w2": w2.astype(W_DTYPE), "b2": b2.reshape(1, -1)}

    def prep_gnn_mlp(p):
        w1, b1, w2, b2 = p
        return {"w1": w1.astype(W_DTYPE), "b1": b1.reshape(1, -1),
                "w2": w2.astype(W_DTYPE), "b2": b2.reshape(1, -1)}

    def prep_decoder(p):
        w1, b1, w2, b2 = p
        pad = _round_up(w2.shape[1], OUT_LANE) - w2.shape[1]
        return {"w1": w1.astype(W_DTYPE), "b1": b1.reshape(1, -1),
                "w2": jnp.pad(w2, ((0, 0), (0, pad))).astype(W_DTYPE),
                "b2": jnp.pad(b2, (0, pad)).reshape(1, -1)}

    return {
        "encoder_node": prep_encoder(raw["encoder_node"]),
        "encoder_edge": prep_encoder(raw["encoder_edge"]),
        "decoder": prep_decoder(raw["decoder"]),
        "gnn": [{"edge": prep_gnn_mlp(b["edge"]),
                 "node": prep_gnn_mlp(b["node"])} for b in raw["gnn"]],
    }


# ---------------------------------------------------------------------------------
# SubgraphPredictor forward (jitted; graph indices/features precomputed on host)
# ---------------------------------------------------------------------------------
def subgraph_predictor_forward(params, norm_states, z, z_target, edge_features,
                               senders, receivers, is_training=True,
                               gather_impl="take"):
    z_last = z[-1]                                   # [N, z_dim]
    n_nodes, z_dim = z_last.shape
    n_edges = edge_features.shape[0]

    node_tile, n_node_pad = _tile_and_pad(n_nodes)
    edge_tile, n_edge_pad = _tile_and_pad(n_edges)

    edge_state = norm_states["edge"]
    node_state = norm_states["node"]
    out_state = norm_states["output"]
    if is_training:                                  # stats over the real (unpadded) rows
        edge_state = normalizer_accumulate(edge_state, edge_features)
        node_state = normalizer_accumulate(node_state, z_last)

    # Fold (x-mean)/std into the encoder first layers (no extra HBM pass); pad the tiny
    # feature dims (K=3/4) and the folded W1 rows to 8 for aligned sublane loads.
    enc_e, enc_n = params["encoder_edge"], params["encoder_node"]
    w1e, b1e = fold_normalizer_into_first_layer(edge_state, enc_e["w1"], enc_e["b1"])
    w1n, b1n = fold_normalizer_into_first_layer(node_state, enc_n["w1"], enc_n["b1"])
    w1e, w1n = _pad_rows_to(w1e, FEAT_ALIGN), _pad_rows_to(w1n, FEAT_ALIGN)

    # Pad rows ONCE; every MLP call reuses the padded arrays (no per-call pad/slice).
    edge_in = _pad_cols_to(_pad_rows(edge_features, n_edge_pad), FEAT_ALIGN)
    node_in = _pad_cols_to(_pad_rows(z_last, n_node_pad), FEAT_ALIGN)
    senders_p = _pad_rows(senders, n_edge_pad).astype(jnp.int32)     # pad with 0 (valid)
    receivers_p = _pad_rows(receivers, n_edge_pad).astype(jnp.int32)
    senders_col = senders_p[:, None]
    receivers_col = receivers_p[:, None]

    # ---- encoders (fused normalize + Linear + ReLU + Linear) ----
    edge_h = fused_mlp([edge_in], w1e, b1e, enc_e["w2"], enc_e["b2"], tile=edge_tile)
    node_h = fused_mlp([node_in], w1n, b1n, enc_n["w2"], enc_n["b2"], tile=node_tile)

    # ---- message passing ----
    for bp in params["gnn"]:
        ep, npm = bp["edge"], bp["node"]
        if gather_impl is not None:
            # Gathers fused into the kernel: node_h is a resident VMEM block, only the
            # int32 sender/receiver tiles stream in -> no [E,128] s_feat/r_feat in HBM.
            # TODO(synk): for meshes where node_h residency (N_pad*512B, double-buffered)
            # no longer fits VMEM (v7x 64 MiB), switch to memory_space=pl.ANY + scalar-
            # prefetched indices + manual make_async_copy row gathers (double-buffered).
            new_edge = fused_mlp(
                [edge_h], ep["w1"], ep["b1"], ep["w2"], ep["b2"], tile=edge_tile,
                gather_src=node_h, gather_idx=(senders_col, receivers_col),
                gather_impl=gather_impl, residual_idx=2, n_valid=n_edges)
        else:
            s_feat = jnp.take(node_h, senders_p, axis=0, mode="clip")
            r_feat = jnp.take(node_h, receivers_p, axis=0, mode="clip")
            new_edge = fused_mlp(
                [s_feat, r_feat, edge_h], ep["w1"], ep["b1"], ep["w2"], ep["b2"],
                tile=edge_tile, residual_idx=2, n_valid=n_edges)

        # f32 scatter-add (padded edge rows were zeroed in-kernel, so index 0 is safe).
        # TODO(synk): sort edges by receiver at graph-build time and fold this aggregation
        # into a Pallas kernel via scalar-prefetched per-receiver segment offsets.
        agg = jax.ops.segment_sum(new_edge, receivers_p, num_segments=n_node_pad)

        new_node = fused_mlp([node_h, agg], npm["w1"], npm["b1"], npm["w2"], npm["b2"],
                             tile=node_tile, residual_idx=0)
        node_h, edge_h = new_node, new_edge

    # ---- decode (lane-dense 128-wide f32 output, sliced once at the very end) ----
    dec = params["decoder"]
    out_padded = fused_mlp([node_h], dec["w1"], dec["b1"], dec["w2"], dec["b2"],
                           tile=node_tile)
    output = out_padded[:n_nodes, :z_dim]

    # ---- loss / prediction ----
    target = z_target - z_last
    if is_training:
        out_state = normalizer_accumulate(out_state, target)
    target_normalized = normalizer_normalize(out_state, target)
    loss = jnp.mean((target_normalized - output) ** 2)

    z_update = normalizer_inverse(out_state, jax.lax.stop_gradient(output))
    z_pred = z_last + z_update
    rmse = jnp.mean(jnp.sqrt(jnp.mean((z_pred - z_target) ** 2, axis=0)))

    new_states = {"edge": edge_state, "node": node_state, "output": out_state}
    return z_pred, loss, rmse, new_states


# ---------------------------------------------------------------------------------
# Example run
# ---------------------------------------------------------------------------------
if __name__ == "__main__":
    key = jax.random.PRNGKey(0)

    # Small triangular grid mesh: 4x4 nodes, 18 triangles (host-side, hoisted out of jit).
    nx, ny = 4, 4
    xs_, ys_ = np.meshgrid(np.linspace(0.0, 1.0, nx), np.linspace(0.0, 1.0, ny),
                           indexing="ij")
    pos = np.stack([xs_.ravel(), ys_.ravel()], axis=1).astype(np.float32)   # [16, 2]
    cells = []
    for i in range(nx - 1):
        for j in range(ny - 1):
            v00, v01 = i * ny + j, i * ny + j + 1
            v10, v11 = (i + 1) * ny + j, (i + 1) * ny + j + 1
            cells.append([v00, v10, v11])
            cells.append([v00, v11, v01])
    cells = np.array(cells, dtype=np.int32)                                 # [18, 3]

    senders_np, receivers_np, edge_features_np = build_mesh_edges(pos, cells)

    z_dim, h_dim, n_blocks = 4, 128, 2          # h_dim=128: standard MGN, lane-dense
    edge_dim = edge_features_np.shape[1]        # rel pos (2) + norm (1)
    n_nodes = pos.shape[0]
    n_edges = edge_features_np.shape[0]
    t_steps = 2

    k_z, k_t, k_p = jax.random.split(key, 3)
    z = jax.random.normal(k_z, (t_steps, n_nodes, z_dim), jnp.float32)
    z_target = jax.random.normal(k_t, (n_nodes, z_dim), jnp.float32)

    params = prepare_params(init_params(k_p, z_dim, edge_dim, h_dim, n_blocks))
    norm_states = {"edge": normalizer_init(edge_dim),
                   "node": normalizer_init(z_dim),
                   "output": normalizer_init(z_dim)}

    # Pick the in-kernel gather implementation supported by this build (or fall back).
    node_tile, n_node_pad = _tile_and_pad(n_nodes)
    edge_tile, n_edge_pad = _tile_and_pad(n_edges)
    gather_impl = probe_in_kernel_gather(n_node_pad, n_edge_pad, edge_tile, h_dim,
                                         n_edges)

    fwd = jax.jit(subgraph_predictor_forward,
                  static_argnames=("is_training", "gather_impl"))
    z_pred, loss, rmse, norm_states = fwd(
        params, norm_states, z, z_target,
        jnp.asarray(edge_features_np), jnp.asarray(senders_np),
        jnp.asarray(receivers_np), is_training=True, gather_impl=gather_impl)

    jax.block_until_ready((z_pred, loss, rmse))
    assert z_pred.shape == (n_nodes, z_dim)
    assert bool(jnp.isfinite(loss)) and bool(jnp.isfinite(rmse))
    print("KERNEL_OK")
</pallas_src>

<mosaic_0001>
module attributes {stable_mosaic.version = 11 : i64} {
  func.func @kernel(%arg0: i32, %arg1: memref<16x8xf32, #tpu.memory_space<vmem>>, %arg2: memref<8x128xf32, #tpu.memory_space<vmem>>, %arg3: memref<1x128xf32, #tpu.memory_space<vmem>>, %arg4: memref<128x128xbf16, #tpu.memory_space<vmem>>, %arg5: memref<1x128xf32, #tpu.memory_space<vmem>>, %arg6: memref<16x128xf32, #tpu.memory_space<vmem>>) attributes {dimension_semantics = [#tpu.dimension_semantics<parallel>], iteration_bounds = array<i64: 1>, scalar_prefetch = 0 : i64, scratch_operands = 0 : i64, tpu.core_type = #tpu.core_type<tc>, window_params = [{transform_indices = @transform_0, window_bounds = array<i64: 16, 8>}, {pipeline_mode = #tpu.pipeline_mode<synchronous>, transform_indices = @transform_1, window_bounds = array<i64: 8, 128>}, {pipeline_mode = #tpu.pipeline_mode<synchronous>, transform_indices = @transform_2, window_bounds = array<i64: 1, 128>}, {pipeline_mode = #tpu.pipeline_mode<synchronous>, transform_indices = @transform_3, window_bounds = array<i64: 128, 128>}, {pipeline_mode = #tpu.pipeline_mode<synchronous>, transform_indices = @transform_4, window_bounds = array<i64: 1, 128>}, {transform_indices = @transform_5, window_bounds = array<i64: 16, 128>}]} {
    %c0 = arith.constant 0 : index
    %c0_0 = arith.constant 0 : index
    %0 = vector.load %arg1[%c0, %c0_0] : memref<16x8xf32, #tpu.memory_space<vmem>>, vector<16x8xf32>
    %c0_1 = arith.constant 0 : index
    %c0_2 = arith.constant 0 : index
    %1 = vector.load %arg2[%c0_1, %c0_2] : memref<8x128xf32, #tpu.memory_space<vmem>>, vector<8x128xf32>
    %cst = arith.constant dense<0.000000e+00> : vector<16x128xf32>
    %2 = tpu.matmul %0, %1, %cst {dimension_numbers = #tpu.dot_dimension_numbers<[1], [0], [0], [1], [0, 0, 1, 1], [], []>} : vector<16x8xf32>, vector<8x128xf32>, vector<16x128xf32> -> vector<16x128xf32>
    %c0_3 = arith.constant 0 : index
    %c0_4 = arith.constant 0 : index
    %3 = vector.load %arg3[%c0_3, %c0_4] : memref<1x128xf32, #tpu.memory_space<vmem>>, vector<1x128xf32>
    %4 = vector.broadcast %3 : vector<1x128xf32> to vector<16x128xf32>
    %5 = arith.addf %2, %4 : vector<16x128xf32>
    %cst_5 = arith.constant 0.000000e+00 : f32
    %6 = vector.broadcast %cst_5 : f32 to vector<16x128xf32>
    %7 = arith.maximumf %5, %6 : vector<16x128xf32>
    %8 = arith.truncf %7 : vector<16x128xf32> to vector<16x128xbf16>
    %c0_6 = arith.constant 0 : index
    %c0_7 = arith.constant 0 : index
    %9 = vector.load %arg4[%c0_6, %c0_7] : memref<128x128xbf16, #tpu.memory_space<vmem>>, vector<128x128xbf16>
    %cst_8 = arith.constant dense<0.000000e+00> : vector<16x128xf32>
    %10 = tpu.matmul %8, %9, %cst_8 {dimension_numbers = #tpu.dot_dimension_numbers<[1], [0], [0], [1], [0, 0, 1, 1], [], []>} : vector<16x128xbf16>, vector<128x128xbf16>, vector<16x128xf32> -> vector<16x128xf32>
    %c0_9 = arith.constant 0 : index
    %c0_10 = arith.constant 0 : index
    %11 = vector.load %arg5[%c0_9, %c0_10] : memref<1x128xf32, #tpu.memory_space<vmem>>, vector<1x128xf32>
    %12 = vector.broadcast %11 : vector<1x128xf32> to vector<16x128xf32>
    %13 = arith.addf %10, %12 : vector<16x128xf32>
    %c0_11 = arith.constant 0 : index
    %c0_12 = arith.constant 0 : index
    %14 = vector.load %arg6[%c0_11, %c0_12] : memref<16x128xf32, #tpu.memory_space<vmem>>, vector<16x128xf32>
    tpu.vector_store %arg6[%c0_11, %c0_12], %13 {strides = array<i32>} : memref<16x128xf32, #tpu.memory_space<vmem>>, vector<16x128xf32>,
    return
  }
  func.func @transform_0(%arg0: i32) -> (i32, i32) {
    %c0_i32 = arith.constant 0 : i32
    %c0_i32_0 = arith.constant 0 : i32
    return %arg0, %c0_i32 : i32, i32
  }
  func.func @transform_1(%arg0: i32) -> (i32, i32) {
    %c0_i32 = arith.constant 0 : i32
    %c0_i32_0 = arith.constant 0 : i32
    %c0_i32_1 = arith.constant 0 : i32
    return %c0_i32, %c0_i32_0 : i32, i32
  }
  func.func @transform_2(%arg0: i32) -> (i32, i32) {
    %c0_i32 = arith.constant 0 : i32
    %c0_i32_0 = arith.constant 0 : i32
    %c0_i32_1 = arith.constant 0 : i32
    return %c0_i32, %c0_i32_0 : i32, i32
  }
  func.func @transform_3(%arg0: i32) -> (i32, i32) {
    %c0_i32 = arith.constant 0 : i32
    %c0_i32_0 = arith.constant 0 : i32
    %c0_i32_1 = arith.constant 0 : i32
    return %c0_i32, %c0_i32_0 : i32, i32
  }
  func.func @transform_4(%arg0: i32) -> (i32, i32) {
    %c0_i32 = arith.constant 0 : i32
    %c0_i32_0 = arith.constant 0 : i32
    %c0_i32_1 = arith.constant 0 : i32
    return %c0_i32, %c0_i32_0 : i32, i32
  }
  func.func @transform_5(%arg0: i32) -> (i32, i32) {
    %c0_i32 = arith.constant 0 : i32
    %c0_i32_0 = arith.constant 0 : i32
    return %arg0, %c0_i32 : i32, i32
  }
}

module attributes {stable_mosaic.version = 11 : i64} {
  func.func @kernel(%arg0: i32, %arg1: memref<48x8xf32, #tpu.memory_space<vmem>>, %arg2: memref<8x128xf32, #tpu.memory_space<vmem>>, %arg3: memref<1x128xf32, #tpu.memory_space<vmem>>, %arg4: memref<128x128xbf16, #tpu.memory_space<vmem>>, %arg5: memref<1x128xf32, #tpu.memory_space<vmem>>, %arg6: memref<48x128xf32, #tpu.memory_space<vmem>>) attributes {dimension_semantics = [#tpu.dimension_semantics<parallel>], iteration_bounds = array<i64: 2>, scalar_prefetch = 0 : i64, scratch_operands = 0 : i64, tpu.core_type = #tpu.core_type<tc>, window_params = [{transform_indices = @transform_0, window_bounds = array<i64: 48, 8>}, {pipeline_mode = #tpu.pipeline_mode<synchronous>, transform_indices = @transform_1, window_bounds = array<i64: 8, 128>}, {pipeline_mode = #tpu.pipeline_mode<synchronous>, transform_indices = @transform_2, window_bounds = array<i64: 1, 128>}, {pipeline_mode = #tpu.pipeline_mode<synchronous>, transform_indices = @transform_3, window_bounds = array<i64: 128, 128>}, {pipeline_mode = #tpu.pipeline_mode<synchronous>, transform_indices = @transform_4, window_bounds = array<i64: 1, 128>}, {transform_indices = @transform_5, window_bounds = array<i64: 48, 128>}]} {
    %c0 = arith.constant 0 : index
    %c0_0 = arith.constant 0 : index
    %0 = vector.load %arg1[%c0, %c0_0] : memref<48x8xf32, #tpu.memory_space<vmem>>, vector<48x8xf32>
    %c0_1 = arith.constant 0 : index
    %c0_2 = arith.constant 0 : index
    %1 = vector.load %arg2[%c0_1, %c0_2] : memref<8x128xf32, #tpu.memory_space<vmem>>, vector<8x128xf32>
    %cst = arith.constant dense<0.000000e+00> : vector<48x128xf32>
    %2 = tpu.matmul %0, %1, %cst {dimension_numbers = #tpu.dot_dimension_numbers<[1], [0], [0], [1], [0, 0, 1, 1], [], []>} : vector<48x8xf32>, vector<8x128xf32>, vector<48x128xf32> -> vector<48x128xf32>
    %c0_3 = arith.constant 0 : index
    %c0_4 = arith.constant 0 : index
    %3 = vector.load %arg3[%c0_3, %c0_4] : memref<1x128xf32, #tpu.memory_space<vmem>>, vector<1x128xf32>
    %4 = vector.broadcast %3 : vector<1x128xf32> to vector<48x128xf32>
    %5 = arith.addf %2, %4 : vector<48x128xf32>
    %cst_5 = arith.constant 0.000000e+00 : f32
    %6 = vector.broadcast %cst_5 : f32 to vector<48x128xf32>
    %7 = arith.maximumf %5, %6 : vector<48x128xf32>
    %8 = arith.truncf %7 : vector<48x128xf32> to vector<48x128xbf16>
    %c0_6 = arith.constant 0 : index
    %c0_7 = arith.constant 0 : index
    %9 = vector.load %arg4[%c0_6, %c0_7] : memref<128x128xbf16, #tpu.memory_space<vmem>>, vector<128x128xbf16>
    %cst_8 = arith.constant dense<0.000000e+00> : vector<48x128xf32>
    %10 = tpu.matmul %8, %9, %cst_8 {dimension_numbers = #tpu.dot_dimension_numbers<[1], [0], [0], [1], [0, 0, 1, 1], [], []>} : vector<48x128xbf16>, vector<128x128xbf16>, vector<48x128xf32> -> vector<48x128xf32>
    %c0_9 = arith.constant 0 : index
    %c0_10 = arith.constant 0 : index
    %11 = vector.load %arg5[%c0_9, %c0_10] : memref<1x128xf32, #tpu.memory_space<vmem>>, vector<1x128xf32>
    %12 = vector.broadcast %11 : vector<1x128xf32> to vector<48x128xf32>
    %13 = arith.addf %10, %12 : vector<48x128xf32>
    %c0_11 = arith.constant 0 : index
    %c0_12 = arith.constant 0 : index
    %14 = vector.load %arg6[%c0_11, %c0_12] : memref<48x128xf32, #tpu.memory_space<vmem>>, vector<48x128xf32>
    tpu.vector_store %arg6[%c0_11, %c0_12], %13 {strides = array<i32>} : memref<48x128xf32, #tpu.memory_space<vmem>>, vector<48x128xf32>,
    return
  }
  func.func @transform_0(%arg0: i32) -> (i32, i32) {
    %c0_i32 = arith.constant 0 : i32
    %c0_i32_0 = arith.constant 0 : i32
    return %arg0, %c0_i32 : i32, i32
  }
  func.func @transform_1(%arg0: i32) -> (i32, i32) {
    %c0_i32 = arith.constant 0 : i32
    %c0_i32_0 = arith.constant 0 : i32
    %c0_i32_1 = arith.constant 0 : i32
    return %c0_i32, %c0_i32_0 : i32, i32
  }
  func.func @transform_2(%arg0: i32) -> (i32, i32) {
    %c0_i32 = arith.constant 0 : i32
    %c0_i32_0 = arith.constant 0 : i32
    %c0_i32_1 = arith.constant 0 : i32
    return %c0_i32, %c0_i32_0 : i32, i32
  }
  func.func @transform_3(%arg0: i32) -> (i32, i32) {
    %c0_i32 = arith.constant 0 : i32
    %c0_i32_0 = arith.constant 0 : i32
    %c0_i32_1 = arith.constant 0 : i32
    return %c0_i32, %c0_i32_0 : i32, i32
  }
  func.func @transform_4(%arg0: i32) -> (i32, i32) {
    %c0_i32 = arith.constant 0 : i32
    %c0_i32_0 = arith.constant 0 : i32
    %c0_i32_1 = arith.constant 0 : i32
    return %c0_i32, %c0_i32_0 : i32, i32
  }
  func.func @transform_5(%arg0: i32) -> (i32, i32) {
    %c0_i32 = arith.constant 0 : i32
    %c0_i32_0 = arith.constant 0 : i32
    return %arg0, %c0_i32 : i32, i32
  }
}

module attributes {stable_mosaic.version = 11 : i64} {
  func.func @kernel(%arg0: i32, %arg1: memref<48x128xf32, #tpu.memory_space<vmem>>, %arg2: memref<48x128xf32, #tpu.memory_space<vmem>>, %arg3: memref<48x128xf32, #tpu.memory_space<vmem>>, %arg4: memref<384x128xbf16, #tpu.memory_space<vmem>>, %arg5: memref<1x128xf32, #tpu.memory_space<vmem>>, %arg6: memref<128x128xbf16, #tpu.memory_space<vmem>>, %arg7: memref<1x128xf32, #tpu.memory_space<vmem>>, %arg8: memref<48x128xf32, #tpu.memory_space<vmem>>) attributes {dimension_semantics = [#tpu.dimension_semantics<parallel>], iteration_bounds = array<i64: 2>, scalar_prefetch = 0 : i64, scratch_operands = 0 : i64, tpu.core_type = #tpu.core_type<tc>, window_params = [{transform_indices = @transform_0, window_bounds = array<i64: 48, 128>}, {transform_indices = @transform_1, window_bounds = array<i64: 48, 128>}, {transform_indices = @transform_2, window_bounds = array<i64: 48, 128>}, {pipeline_mode = #tpu.pipeline_mode<synchronous>, transform_indices = @transform_3, window_bounds = array<i64: 384, 128>}, {pipeline_mode = #tpu.pipeline_mode<synchronous>, transform_indices = @transform_4, window_bounds = array<i64: 1, 128>}, {pipeline_mode = #tpu.pipeline_mode<synchronous>, transform_indices = @transform_5, window_bounds = array<i64: 128, 128>}, {pipeline_mode = #tpu.pipeline_mode<synchronous>, transform_indices = @transform_6, window_bounds = array<i64: 1, 128>}, {transform_indices = @transform_7, window_bounds = array<i64: 48, 128>}]} {
    %c0 = arith.constant 0 : index
    %c0_0 = arith.constant 0 : index
    %0 = vector.load %arg1[%c0, %c0_0] : memref<48x128xf32, #tpu.memory_space<vmem>>, vector<48x128xf32>
    %c0_1 = arith.constant 0 : index
    %c0_2 = arith.constant 0 : index
    %1 = vector.load %arg2[%c0_1, %c0_2] : memref<48x128xf32, #tpu.memory_space<vmem>>, vector<48x128xf32>
    %c0_3 = arith.constant 0 : index
    %c0_4 = arith.constant 0 : index
    %2 = vector.load %arg3[%c0_3, %c0_4] : memref<48x128xf32, #tpu.memory_space<vmem>>, vector<48x128xf32>
    %3 = arith.truncf %0 : vector<48x128xf32> to vector<48x128xbf16>
    %4 = arith.truncf %1 : vector<48x128xf32> to vector<48x128xbf16>
    %5 = arith.truncf %2 : vector<48x128xf32> to vector<48x128xbf16>
    %6 = tpu.concatenate %3, %4, %5 in 1 : vector<48x128xbf16>, vector<48x128xbf16>, vector<48x128xbf16> -> vector<48x384xbf16>
    %c0_5 = arith.constant 0 : index
    %c0_6 = arith.constant 0 : index
    %7 = vector.load %arg4[%c0_5, %c0_6] : memref<384x128xbf16, #tpu.memory_space<vmem>>, vector<384x128xbf16>
    %cst = arith.constant dense<0.000000e+00> : vector<48x128xf32>
    %8 = tpu.matmul %6, %7, %cst {dimension_numbers = #tpu.dot_dimension_numbers<[1], [0], [0], [1], [0, 0, 1, 1], [], []>} : vector<48x384xbf16>, vector<384x128xbf16>, vector<48x128xf32> -> vector<48x128xf32>
    %c0_7 = arith.constant 0 : index
    %c0_8 = arith.constant 0 : index
    %9 = vector.load %arg5[%c0_7, %c0_8] : memref<1x128xf32, #tpu.memory_space<vmem>>, vector<1x128xf32>
    %10 = vector.broadcast %9 : vector<1x128xf32> to vector<48x128xf32>
    %11 = arith.addf %8, %10 : vector<48x128xf32>
    %cst_9 = arith.constant 0.000000e+00 : f32
    %12 = vector.broadcast %cst_9 : f32 to vector<48x128xf32>
    %13 = arith.maximumf %11, %12 : vector<48x128xf32>
    %14 = arith.truncf %13 : vector<48x128xf32> to vector<48x128xbf16>
    %c0_10 = arith.constant 0 : index
    %c0_11 = arith.constant 0 : index
    %15 = vector.load %arg6[%c0_10, %c0_11] : memref<128x128xbf16, #tpu.memory_space<vmem>>, vector<128x128xbf16>
    %cst_12 = arith.constant dense<0.000000e+00> : vector<48x128xf32>
    %16 = tpu.matmul %14, %15, %cst_12 {dimension_numbers = #tpu.dot_dimension_numbers<[1], [0], [0], [1], [0, 0, 1, 1], [], []>} : vector<48x128xbf16>, vector<128x128xbf16>, vector<48x128xf32> -> vector<48x128xf32>
    %c0_13 = arith.constant 0 : index
    %c0_14 = arith.constant 0 : index
    %17 = vector.load %arg7[%c0_13, %c0_14] : memref<1x128xf32, #tpu.memory_space<vmem>>, vector<1x128xf32>
    %18 = vector.broadcast %17 : vector<1x128xf32> to vector<48x128xf32>
    %19 = arith.addf %16, %18 : vector<48x128xf32>
    %20 = arith.addf %19, %2 : vector<48x128xf32>
    %c48_i32 = arith.constant 48 : i32
    %21 = arith.muli %arg0, %c48_i32 : i32
    %22 = tpu.iota {dimensions = array<i32: 0>} : vector<48x1xi32>
    %23 = vector.broadcast %21 : i32 to vector<48x1xi32>
    %24 = arith.addi %23, %22 : vector<48x1xi32>
    %c66_i32 = arith.constant 66 : i32
    %25 = vector.broadcast %c66_i32 : i32 to vector<48x1xi32>
    %26 = arith.cmpi slt, %24, %25 : vector<48x1xi32>
    %cst_15 = arith.constant 0.000000e+00 : f32
    %27 = vector.shape_cast %26 : vector<48x1xi1> to vector<48x1xi1>
    %28 = vector.broadcast %27 : vector<48x1xi1> to vector<48x128xi1>
    %29 = vector.broadcast %cst_15 : f32 to vector<48x128xf32>
    %30 = arith.select %28, %20, %29 : vector<48x128xi1>, vector<48x128xf32>
    %c0_16 = arith.constant 0 : index
    %c0_17 = arith.constant 0 : index
    %31 = vector.load %arg8[%c0_16, %c0_17] : memref<48x128xf32, #tpu.memory_space<vmem>>, vector<48x128xf32>
    tpu.vector_store %arg8[%c0_16, %c0_17], %30 {strides = array<i32>} : memref<48x128xf32, #tpu.memory_space<vmem>>, vector<48x128xf32>,
    return
  }
  func.func @transform_0(%arg0: i32) -> (i32, i32) {
    %c0_i32 = arith.constant 0 : i32
    %c0_i32_0 = arith.constant 0 : i32
    return %arg0, %c0_i32 : i32, i32
  }
  func.func @transform_1(%arg0: i32) -> (i32, i32) {
    %c0_i32 = arith.constant 0 : i32
    %c0_i32_0 = arith.constant 0 : i32
    return %arg0, %c0_i32 : i32, i32
  }
  func.func @transform_2(%arg0: i32) -> (i32, i32) {
    %c0_i32 = arith.constant 0 : i32
    %c0_i32_0 = arith.constant 0 : i32
    return %arg0, %c0_i32 : i32, i32
  }
  func.func @transform_3(%arg0: i32) -> (i32, i32) {
    %c0_i32 = arith.constant 0 : i32
    %c0_i32_0 = arith.constant 0 : i32
    %c0_i32_1 = arith.constant 0 : i32
    return %c0_i32, %c0_i32_0 : i32, i32
  }
  func.func @transform_4(%arg0: i32) -> (i32, i32) {
    %c0_i32 = arith.constant 0 : i32
    %c0_i32_0 = arith.constant 0 : i32
    %c0_i32_1 = arith.constant 0 : i32
    return %c0_i32, %c0_i32_0 : i32, i32
  }
  func.func @transform_5(%arg0: i32) -> (i32, i32) {
    %c0_i32 = arith.constant 0 : i32
    %c0_i32_0 = arith.constant 0 : i32
    %c0_i32_1 = arith.constant 0 : i32
    return %c0_i32, %c0_i32_0 : i32, i32
  }
  func.func @transform_6(%arg0: i32) -> (i32, i32) {
    %c0_i32 = arith.constant 0 : i32
    %c0_i32_0 = arith.constant 0 : i32
    %c0_i32_1 = arith.constant 0 : i32
    return %c0_i32, %c0_i32_0 : i32, i32
  }
  func.func @transform_7(%arg0: i32) -> (i32, i32) {
    %c0_i32 = arith.constant 0 : i32
    %c0_i32_0 = arith.constant 0 : i32
    return %arg0, %c0_i32 : i32, i32
  }
}

module attributes {stable_mosaic.version = 11 : i64} {
  func.func @kernel(%arg0: i32, %arg1: memref<16x128xf32, #tpu.memory_space<vmem>>, %arg2: memref<16x128xf32, #tpu.memory_space<vmem>>, %arg3: memref<256x128xbf16, #tpu.memory_space<vmem>>, %arg4: memref<1x128xf32, #tpu.memory_space<vmem>>, %arg5: memref<128x128xbf16, #tpu.memory_space<vmem>>, %arg6: memref<1x128xf32, #tpu.memory_space<vmem>>, %arg7: memref<16x128xf32, #tpu.memory_space<vmem>>) attributes {dimension_semantics = [#tpu.dimension_semantics<parallel>], iteration_bounds = array<i64: 1>, scalar_prefetch = 0 : i64, scratch_operands = 0 : i64, tpu.core_type = #tpu.core_type<tc>, window_params = [{transform_indices = @transform_0, window_bounds = array<i64: 16, 128>}, {transform_indices = @transform_1, window_bounds = array<i64: 16, 128>}, {pipeline_mode = #tpu.pipeline_mode<synchronous>, transform_indices = @transform_2, window_bounds = array<i64: 256, 128>}, {pipeline_mode = #tpu.pipeline_mode<synchronous>, transform_indices = @transform_3, window_bounds = array<i64: 1, 128>}, {pipeline_mode = #tpu.pipeline_mode<synchronous>, transform_indices = @transform_4, window_bounds = array<i64: 128, 128>}, {pipeline_mode = #tpu.pipeline_mode<synchronous>, transform_indices = @transform_5, window_bounds = array<i64: 1, 128>}, {transform_indices = @transform_6, window_bounds = array<i64: 16, 128>}]} {
    %c0 = arith.constant 0 : index
    %c0_0 = arith.constant 0 : index
    %0 = vector.load %arg1[%c0, %c0_0] : memref<16x128xf32, #tpu.memory_space<vmem>>, vector<16x128xf32>
    %c0_1 = arith.constant 0 : index
    %c0_2 = arith.constant 0 : index
    %1 = vector.load %arg2[%c0_1, %c0_2] : memref<16x128xf32, #tpu.memory_space<vmem>>, vector<16x128xf32>
    %2 = arith.truncf %0 : vector<16x128xf32> to vector<16x128xbf16>
    %3 = arith.truncf %1 : vector<16x128xf32> to vector<16x128xbf16>
    %4 = tpu.concatenate %2, %3 in 1 : vector<16x128xbf16>, vector<16x128xbf16> -> vector<16x256xbf16>
    %c0_3 = arith.constant 0 : index
    %c0_4 = arith.constant 0 : index
    %5 = vector.load %arg3[%c0_3, %c0_4] : memref<256x128xbf16, #tpu.memory_space<vmem>>, vector<256x128xbf16>
    %cst = arith.constant dense<0.000000e+00> : vector<16x128xf32>
    %6 = tpu.matmul %4, %5, %cst {dimension_numbers = #tpu.dot_dimension_numbers<[1], [0], [0], [1], [0, 0, 1, 1], [], []>} : vector<16x256xbf16>, vector<256x128xbf16>, vector<16x128xf32> -> vector<16x128xf32>
    %c0_5 = arith.constant 0 : index
    %c0_6 = arith.constant 0 : index
    %7 = vector.load %arg4[%c0_5, %c0_6] : memref<1x128xf32, #tpu.memory_space<vmem>>, vector<1x128xf32>
    %8 = vector.broadcast %7 : vector<1x128xf32> to vector<16x128xf32>
    %9 = arith.addf %6, %8 : vector<16x128xf32>
    %cst_7 = arith.constant 0.000000e+00 : f32
    %10 = vector.broadcast %cst_7 : f32 to vector<16x128xf32>
    %11 = arith.maximumf %9, %10 : vector<16x128xf32>
    %12 = arith.truncf %11 : vector<16x128xf32> to vector<16x128xbf16>
    %c0_8 = arith.constant 0 : index
    %c0_9 = arith.constant 0 : index
    %13 = vector.load %arg5[%c0_8, %c0_9] : memref<128x128xbf16, #tpu.memory_space<vmem>>, vector<128x128xbf16>
    %cst_10 = arith.constant dense<0.000000e+00> : vector<16x128xf32>
    %14 = tpu.matmul %12, %13, %cst_10 {dimension_numbers = #tpu.dot_dimension_numbers<[1], [0], [0], [1], [0, 0, 1, 1], [], []>} : vector<16x128xbf16>, vector<128x128xbf16>, vector<16x128xf32> -> vector<16x128xf32>
    %c0_11 = arith.constant 0 : index
    %c0_12 = arith.constant 0 : index
    %15 = vector.load %arg6[%c0_11, %c0_12] : memref<1x128xf32, #tpu.memory_space<vmem>>, vector<1x128xf32>
    %16 = vector.broadcast %15 : vector<1x128xf32> to vector<16x128xf32>
    %17 = arith.addf %14, %16 : vector<16x128xf32>
    %18 = arith.addf %17, %0 : vector<16x128xf32>
    %c0_13 = arith.constant 0 : index
    %c0_14 = arith.constant 0 : index
    %19 = vector.load %arg7[%c0_13, %c0_14] : memref<16x128xf32, #tpu.memory_space<vmem>>, vector<16x128xf32>
    tpu.vector_store %arg7[%c0_13, %c0_14], %18 {strides = array<i32>} : memref<16x128xf32, #tpu.memory_space<vmem>>, vector<16x128xf32>,
    return
  }
  func.func @transform_0(%arg0: i32) -> (i32, i32) {
    %c0_i32 = arith.constant 0 : i32
    %c0_i32_0 = arith.constant 0 : i32
    return %arg0, %c0_i32 : i32, i32
  }
  func.func @transform_1(%arg0: i32) -> (i32, i32) {
    %c0_i32 = arith.constant 0 : i32
    %c0_i32_0 = arith.constant 0 : i32
    return %arg0, %c0_i32 : i32, i32
  }
  func.func @transform_2(%arg0: i32) -> (i32, i32) {
    %c0_i32 = arith.constant 0 : i32
    %c0_i32_0 = arith.constant 0 : i32
    %c0_i32_1 = arith.constant 0 : i32
    return %c0_i32, %c0_i32_0 : i32, i32
  }
  func.func @transform_3(%arg0: i32) -> (i32, i32) {
    %c0_i32 = arith.constant 0 : i32
    %c0_i32_0 = arith.constant 0 : i32
    %c0_i32_1 = arith.constant 0 : i32
    return %c0_i32, %c0_i32_0 : i32, i32
  }
  func.func @transform_4(%arg0: i32) -> (i32, i32) {
    %c0_i32 = arith.constant 0 : i32
    %c0_i32_0 = arith.constant 0 : i32
    %c0_i32_1 = arith.constant 0 : i32
    return %c0_i32, %c0_i32_0 : i32, i32
  }
  func.func @transform_5(%arg0: i32) -> (i32, i32) {
    %c0_i32 = arith.constant 0 : i32
    %c0_i32_0 = arith.constant 0 : i32
    %c0_i32_1 = arith.constant 0 : i32
    return %c0_i32, %c0_i32_0 : i32, i32
  }
  func.func @transform_6(%arg0: i32) -> (i32, i32) {
    %c0_i32 = arith.constant 0 : i32
    %c0_i32_0 = arith.constant 0 : i32
    return %arg0, %c0_i32 : i32, i32
  }
}

module attributes {stable_mosaic.version = 11 : i64} {
  func.func @kernel(%arg0: i32, %arg1: memref<16x128xf32, #tpu.memory_space<vmem>>, %arg2: memref<128x128xbf16, #tpu.memory_space<vmem>>, %arg3: memref<1x128xf32, #tpu.memory_space<vmem>>, %arg4: memref<128x128xbf16, #tpu.memory_space<vmem>>, %arg5: memref<1x128xf32, #tpu.memory_space<vmem>>, %arg6: memref<16x128xf32, #tpu.memory_space<vmem>>) attributes {dimension_semantics = [#tpu.dimension_semantics<parallel>], iteration_bounds = array<i64: 1>, scalar_prefetch = 0 : i64, scratch_operands = 0 : i64, tpu.core_type = #tpu.core_type<tc>, window_params = [{transform_indices = @transform_0, window_bounds = array<i64: 16, 128>}, {pipeline_mode = #tpu.pipeline_mode<synchronous>, transform_indices = @transform_1, window_bounds = array<i64: 128, 128>}, {pipeline_mode = #tpu.pipeline_mode<synchronous>, transform_indices = @transform_2, window_bounds = array<i64: 1, 128>}, {pipeline_mode = #tpu.pipeline_mode<synchronous>, transform_indices = @transform_3, window_bounds = array<i64: 128, 128>}, {pipeline_mode = #tpu.pipeline_mode<synchronous>, transform_indices = @transform_4, window_bounds = array<i64: 1, 128>}, {transform_indices = @transform_5, window_bounds = array<i64: 16, 128>}]} {
    %c0 = arith.constant 0 : index
    %c0_0 = arith.constant 0 : index
    %0 = vector.load %arg1[%c0, %c0_0] : memref<16x128xf32, #tpu.memory_space<vmem>>, vector<16x128xf32>
    %1 = arith.truncf %0 : vector<16x128xf32> to vector<16x128xbf16>
    %c0_1 = arith.constant 0 : index
    %c0_2 = arith.constant 0 : index
    %2 = vector.load %arg2[%c0_1, %c0_2] : memref<128x128xbf16, #tpu.memory_space<vmem>>, vector<128x128xbf16>
    %cst = arith.constant dense<0.000000e+00> : vector<16x128xf32>
    %3 = tpu.matmul %1, %2, %cst {dimension_numbers = #tpu.dot_dimension_numbers<[1], [0], [0], [1], [0, 0, 1, 1], [], []>} : vector<16x128xbf16>, vector<128x128xbf16>, vector<16x128xf32> -> vector<16x128xf32>
    %c0_3 = arith.constant 0 : index
    %c0_4 = arith.constant 0 : index
    %4 = vector.load %arg3[%c0_3, %c0_4] : memref<1x128xf32, #tpu.memory_space<vmem>>, vector<1x128xf32>
    %5 = vector.broadcast %4 : vector<1x128xf32> to vector<16x128xf32>
    %6 = arith.addf %3, %5 : vector<16x128xf32>
    %cst_5 = arith.constant 0.000000e+00 : f32
    %7 = vector.broadcast %cst_5 : f32 to vector<16x128xf32>
    %8 = arith.maximumf %6, %7 : vector<16x128xf32>
    %9 = arith.truncf %8 : vector<16x128xf32> to vector<16x128xbf16>
    %c0_6 = arith.constant 0 : index
    %c0_7 = arith.constant 0 : index
    %10 = vector.load %arg4[%c0_6, %c0_7] : memref<128x128xbf16, #tpu.memory_space<vmem>>, vector<128x128xbf16>
    %cst_8 = arith.constant dense<0.000000e+00> : vector<16x128xf32>
    %11 = tpu.matmul %9, %10, %cst_8 {dimension_numbers = #tpu.dot_dimension_numbers<[1], [0], [0], [1], [0, 0, 1, 1], [], []>} : vector<16x128xbf16>, vector<128x128xbf16>, vector<16x128xf32> -> vector<16x128xf32>
    %c0_9 = arith.constant 0 : index
    %c0_10 = arith.constant 0 : index
    %12 = vector.load %arg5[%c0_9, %c0_10] : memref<1x128xf32, #tpu.memory_space<vmem>>, vector<1x128xf32>
    %13 = vector.broadcast %12 : vector<1x128xf32> to vector<16x128xf32>
    %14 = arith.addf %11, %13 : vector<16x128xf32>
    %c0_11 = arith.constant 0 : index
    %c0_12 = arith.constant 0 : index
    %15 = vector.load %arg6[%c0_11, %c0_12] : memref<16x128xf32, #tpu.memory_space<vmem>>, vector<16x128xf32>
    tpu.vector_store %arg6[%c0_11, %c0_12], %14 {strides = array<i32>} : memref<16x128xf32, #tpu.memory_space<vmem>>, vector<16x128xf32>,
    return
  }
  func.func @transform_0(%arg0: i32) -> (i32, i32) {
    %c0_i32 = arith.constant 0 : i32
    %c0_i32_0 = arith.constant 0 : i32
    return %arg0, %c0_i32 : i32, i32
  }
  func.func @transform_1(%arg0: i32) -> (i32, i32) {
    %c0_i32 = arith.constant 0 : i32
    %c0_i32_0 = arith.constant 0 : i32
    %c0_i32_1 = arith.constant 0 : i32
    return %c0_i32, %c0_i32_0 : i32, i32
  }
  func.func @transform_2(%arg0: i32) -> (i32, i32) {
    %c0_i32 = arith.constant 0 : i32
    %c0_i32_0 = arith.constant 0 : i32
    %c0_i32_1 = arith.constant 0 : i32
    return %c0_i32, %c0_i32_0 : i32, i32
  }
  func.func @transform_3(%arg0: i32) -> (i32, i32) {
    %c0_i32 = arith.constant 0 : i32
    %c0_i32_0 = arith.constant 0 : i32
    %c0_i32_1 = arith.constant 0 : i32
    return %c0_i32, %c0_i32_0 : i32, i32
  }
  func.func @transform_4(%arg0: i32) -> (i32, i32) {
    %c0_i32 = arith.constant 0 : i32
    %c0_i32_0 = arith.constant 0 : i32
    %c0_i32_1 = arith.constant 0 : i32
    return %c0_i32, %c0_i32_0 : i32, i32
  }
  func.func @transform_5(%arg0: i32) -> (i32, i32) {
    %c0_i32 = arith.constant 0 : i32
    %c0_i32_0 = arith.constant 0 : i32
    return %arg0, %c0_i32 : i32, i32
  }
}

</mosaic_0001>

<bundles_post_ra>
// kernel: subgraph_predictor_forward.8
= control target key start
LH: loop header
LB: loop body
LE: loop exit
PB: predicated region body
PF: predicated region fallthrough
CT: control target
= control target key end

     0   :  { %vm31_vm0 = vcmask 64512   ;;  %v293_v3 = vmov 0.0   ;;  %vm294_vm1 = vmmov 0   ;;  %s370_s1 = inlined_call_operand.vmem [shape: f32[8,128], index: 1, kind: input, shape index: {}]   ;;  %s371_s0 = inlined_call_operand.vmem [shape: f32[16,8], index: 0, kind: input, shape index: {}]   ;;  %s372_s3 = inlined_call_operand.vmem [shape: bf16[128,128], index: 3, kind: input, shape index: {}]   ;;  %s373_s2 = inlined_call_operand.vmem [shape: f32[1,128], index: 2, kind: input, shape index: {}]   ;;  %s374_s4 = inlined_call_operand.vmem [shape: f32[1,128], index: 4, kind: input, shape index: {}]   ;;  %s375_s5 = inlined_call_operand.vmem [shape: f32[16,128], index: 5, kind: output, shape index: {}]  }
   0x1   :  { %v23_v0 = vld [vmem:[%s370_s1] sm:$0xff]  ;;  %v22_v2 = vld [vmem:[%s371_s0 + $0x8] sm:$0xff]  ;;  %263 = vmatprep.subr.bf16.mxu1 %v293_v3  ;;  %v285_v4 = vld [vmem:[%s372_s3 + $0x38] sm:$0xff]   ;;  %279 = vmatprep.mubr.msk.bf16.mxu1 %vm294_vm1, %v293_v3 }
   0x2   :  { %v21_v1 = vld [vmem:[%s371_s0] sm:$0xff]  ;;  %258 = vmatprep.subr.mxu0 %v23_v0  ;;  %264 = vmatpush3.bf16.msra.mxu1 %v285_v4  ;;  %v286_v5 = vld [vmem:[%s372_s3 + $0x30] sm:$0xff]   ;;  %v287_v6 = vld [vmem:[%s372_s3 + $0x28] sm:$0xff]  }
   0x3   :  { %260 = vmatprep.mubr.msk.f32.mxu0 %vm31_vm0, %v21_v1  ;;  %259 = vmatpush3.msra.mxu0 %v23_v0  ;;  %v288_v7 = vld [vmem:[%s372_s3 + $0x20] sm:$0xff]   ;;  %v289_v8 = vld [vmem:[%s372_s3 + $0x18] sm:$0xff]   ;;  %v290_v9 = vld [vmem:[%s372_s3 + $0x10] sm:$0xff]  }
   0x4   :  { %261 = vmatmul.mubr.msk.f32.vlgmr.msra.gmra.mxu0 %vm31_vm0, %v22_v2  ;;  %265 = vmatprep.subr.bf16.mxu1 %v293_v3  ;;  %v291_v10 = vld [vmem:[%s372_s3 + $0x8] sm:$0xff]   ;;  %v292_v11 = vld [vmem:[%s372_s3] sm:$0xff]  }
   0x5   :  { %v234_v12 = vld [vmem:[%s373_s2] ss:$0 sm:$0xff] }
   0x6   :  { %266 = vmatpush3.bf16.msra.mxu1 %v286_v5  ;;  %v237_v20 = vld [vmem:[%s374_s4] ss:$0 sm:$0xff] }
   0x7   :  { %267 = vmatprep.subr.bf16.mxu1 %v293_v3 }
   0xa   :  { %268 = vmatpush3.bf16.msra.mxu1 %v287_v6 }
   0xb   :  { %269 = vmatprep.subr.bf16.mxu1 %v293_v3 }
   0xe   :  { %270 = vmatpush3.bf16.msra.mxu1 %v288_v7 }
   0xf   :  { %271 = vmatprep.subr.bf16.mxu1 %v293_v3 }
  0x12   :  { %272 = vmatpush3.bf16.msra.mxu1 %v289_v8 }
  0x13   :  { %273 = vmatprep.subr.bf16.mxu1 %v293_v3 }
  0x16   :  { %274 = vmatpush3.bf16.msra.mxu1 %v290_v9 }
  0x17   :  { %275 = vmatprep.subr.bf16.mxu1 %v293_v3 }
  0x1a   :  { %276 = vmatpush3.bf16.msra.mxu1 %v291_v10 }
  0x1b   :  { %277 = vmatprep.subr.bf16.mxu1 %v293_v3 }
  0x1e   :  { %278 = vmatpush3.bf16.msra.mxu1 %v292_v11 }
  0xc4   :  { %v262_v13 = vpop.f32.mrf.mxu0 }
  0xc5   :  { %v110_v14 = vadd.f32 %v262_v13, %v234_v12 }
  0xc6   :  { %v104_v15 = vpop.f32.mrf.mxu0 }
  0xc7   :  { %v105_v16 = vadd.f32 %v234_v12, %v104_v15  ;;  %v114_v17 = vmax.f32 %v110_v14, 0.0 }
  0xc9   :  { %v113_v18 = vmax.f32 %v105_v16, 0.0 }
  0xcb   :  { %v115_v19 = vpack.c.bf16 %v114_v17, %v113_v18 }
  0xcd   :  { %280 = vmatmul.mubr.bf16.vlgmr.msra.gmra.mxu1 %v115_v19 }
 0x18d   :  { %v221_v21 = vpop.f32.mrf.mxu1 }
 0x18e   :  { %v222_v22 = vadd.f32 %v237_v20, %v221_v21 }
 0x18f   :  { %v281_v23 = vpop.f32.mrf.mxu1 }
 0x190   :  { %228 = vst [vmem:[%s375_s5] sm:$0xff] %v222_v22 }
 0x191   :  { %v224_v24 = vpop.f32.mrf.mxu1 }
 0x192   :  { %v225_v25 = vadd.f32 %v237_v20, %v224_v24 }
 0x193   :  { %v282_v26 = vpop.f32.mrf.mxu1 }
 0x194   :  { %229 = vst [vmem:[%s375_s5 + $0x8] sm:$0xff] %v225_v25 }

// kernel: subgraph_predictor_forward.7
= control target key start
LH: loop header
LB: loop body
LE: loop exit
PB: predicated region body
PF: predicated region fallthrough
CT: control target
= control target key end

     0   :  { %s712_s18 = smov 0   ;;  %s797_s0 = inlined_call_operand.vmem [shape: f32[96,8], index: 0, kind: input, shape index: {}]   ;;  %s798_s1 = inlined_call_operand.vmem [shape: f32[8,128], index: 1, kind: input, shape index: {}]   ;;  %s799_s2 = inlined_call_operand.vmem [shape: f32[1,128], index: 2, kind: input, shape index: {}]   ;;  %s800_s3 = inlined_call_operand.vmem [shape: bf16[128,128], index: 3, kind: input, shape index: {}]   ;;  %s801_s4 = inlined_call_operand.vmem [shape: f32[1,128], index: 4, kind: input, shape index: {}]   ;;  %s802_s5 = inlined_call_operand.vmem [shape: f32[96,128], index: 5, kind: output, shape index: {}]  }
   0x1 LB: > { %s556_s19 = sadd.s32 4294967295, %s678_s18   ;;  %p560_p0 = scmp.ge.s32.totalorder %s678_s18, 1  ;;  %s678_s18 = sphi %s712_s18, %s15_s18  }
   0x2   : > { %p188_p1 = scmp.lt.s32.totalorder %s678_s18, 3 }
   0x4   : > { %p189_p2 = pnand %p560_p0, %p188_p1 }
   0x5   : > { %s216_s22 = smul.u32 (!%p189_p2), 6, %s556_s19 }
   0x6   : > { %192 = sbr.rel (%p189_p2) target bundleno = 429 (0x1ad), region = 40 }
   0x7   : > { %p217_p3 = scmp.lt.s32.totalorder (!%p189_p2), %s216_s22, 11 }
   0xb   : > { %v235_v0 = vld [vmem:[%s798_s1] sm:$0xff]  ;;  %v664_v1 = vld [vmem:[%s800_s3 + $0x38] sm:$0xff]   ;;  %v680_v2 = vmov 0.0   ;;  %s804_s22 = smov (!%p217_p3, %s216_s22), 11  ;;  %v665_v3 = vld [vmem:[%s800_s3 + $0x30] sm:$0xff]   ;;  %vm243_vm0 = vcmask 64512  }
   0xc   : > { %599 = vmatprep.subr.mxu0 %v235_v0  ;;  %638 = vmatprep.subr.bf16.mxu1 %v680_v2  ;;  %s561_s27 = sshll.u32 %s804_s22, 3  ;;  %v666_v7 = vld [vmem:[%s800_s3 + $0x28] sm:$0xff]   ;;  %v667_v10 = vld [vmem:[%s800_s3 + $0x20] sm:$0xff]   ;;  %v668_v12 = vld [vmem:[%s800_s3 + $0x18] sm:$0xff]   ;;  %vm681_vm1 = vmmov 0  }
   0xd   : > { %600 = vmatpush3.msra.mxu0 %v235_v0  ;;  %646 = vmatpush3.bf16.msra.mxu1 %v664_v1  ;;  %s220_s30 = scalar_lea.vmem %s797_s0, %s561_s27  ;;  %v669_v13 = vld [vmem:[%s800_s3 + $0x10] sm:$0xff]   ;;  %v670_v14 = vld [vmem:[%s800_s3 + $0x8] sm:$0xff]   ;;  %v671_v15 = vld [vmem:[%s800_s3] sm:$0xff]   ;;  %s226_s26 = scalar_lea.vmem %s802_s5, %s561_s27 }
   0xe   : > { %610 = vmatprep.subr.bf16.mxu0 %v680_v2  ;;  %639 = vmatprep.subr.bf16.mxu1 %v680_v2  ;;  %v229_v4 = vld [vmem:[%s220_s30] sm:$0xff]  ;;  %v230_v5 = vld [vmem:[%s220_s30 + $0x8] sm:$0xff]  ;;  %v231_v6 = vld [vmem:[%s220_s30 + $0x10] sm:$0xff] }
   0xf   : > { %601 = vmatprep.mubr.msk.f32.mxu0 %vm243_vm0, %v229_v4  ;;  %v232_v8 = vld [vmem:[%s220_s30 + $0x18] sm:$0xff]  ;;  %v233_v9 = vld [vmem:[%s220_s30 + $0x20] sm:$0xff]  ;;  %v234_v11 = vld [vmem:[%s220_s30 + $0x28] sm:$0xff]  ;;  %630 = vmatprep.mubr.msk.bf16.mxu1 %vm681_vm1, %v680_v2 }
  0x10   : > { %602 = vmatmul.mubr.msk.f32.vlgmr.msra.gmra.mxu0 %vm243_vm0, %v230_v5  ;;  %v563_v16 = vld [vmem:[%s799_s2] ss:$0 sm:$0xff] }
  0x11   : > { %647 = vmatpush3.bf16.msra.mxu1 %v665_v3  ;;  %604 = vmatprep.mubr.msk.f32.mxu0 %vm243_vm0, %v231_v6  ;;  %v570_v38 = vld [vmem:[%s801_s4] ss:$0 sm:$0xff] }
  0x12   : > { %640 = vmatprep.subr.bf16.mxu1 %v680_v2  ;;  %611 = vmatpush3.bf16.msra.mxu0 %v664_v1 }
  0x13   : > { %612 = vmatprep.subr.bf16.mxu0 %v680_v2 }
  0x14   : > { %605 = vmatmul.mubr.msk.f32.gmra.mxu0 %vm243_vm0, %v232_v8 }
  0x15   : > { %648 = vmatpush3.bf16.msra.mxu1 %v666_v7  ;;  %607 = vmatprep.mubr.msk.f32.mxu0 %vm243_vm0, %v233_v9 }
  0x16   : > { %641 = vmatprep.subr.bf16.mxu1 %v680_v2  ;;  %613 = vmatpush3.bf16.msra.mxu0 %v665_v3 }
  0x17   : > { %614 = vmatprep.subr.bf16.mxu0 %v680_v2 }
  0x18   : > { %608 = vmatmul.mubr.msk.f32.gmra.mxu0 %vm243_vm0, %v234_v11 }
  0x19   : > { %649 = vmatpush3.bf16.msra.mxu1 %v667_v10  ;;  %626 = vmatprep.mubr.msk.bf16.mxu0 %vm681_vm1, %v680_v2 }
  0x1a   : > { %642 = vmatprep.subr.bf16.mxu1 %v680_v2  ;;  %615 = vmatpush3.bf16.msra.mxu0 %v666_v7 }
  0x1b   : > { %616 = vmatprep.subr.bf16.mxu0 %v680_v2 }
  0x1d   : > { %650 = vmatpush3.bf16.msra.mxu1 %v668_v12 }
  0x1e   : > { %643 = vmatprep.subr.bf16.mxu1 %v680_v2  ;;  %617 = vmatpush3.bf16.msra.mxu0 %v667_v10 }
  0x1f   : > { %618 = vmatprep.subr.bf16.mxu0 %v680_v2 }
  0x21   : > { %651 = vmatpush3.bf16.msra.mxu1 %v669_v13 }
  0x22   : > { %644 = vmatprep.subr.bf16.mxu1 %v680_v2  ;;  %619 = vmatpush3.bf16.msra.mxu0 %v668_v12 }
  0x23   : > { %620 = vmatprep.subr.bf16.mxu0 %v680_v2 }
  0x25   : > { %652 = vmatpush3.bf16.msra.mxu1 %v670_v14 }
  0x26   : > { %621 = vmatpush3.bf16.msra.mxu0 %v669_v13  ;;  %645 = vmatprep.subr.bf16.mxu1 %v680_v2 }
  0x27   : > { %622 = vmatprep.subr.bf16.mxu0 %v680_v2 }
  0x29   : > { %653 = vmatpush3.bf16.msra.mxu1 %v671_v15 }
  0x2a   : > { %623 = vmatpush3.bf16.msra.mxu0 %v670_v14 }
  0x2b   : > { %624 = vmatprep.subr.bf16.mxu0 %v680_v2 }
  0x2e   : > { %625 = vmatpush3.bf16.msra.mxu0 %v671_v15 }
  0xd0   : > { %v603_v17 = vpop.f32.mrf.mxu0 }
  0xd1   : > { %v334_v18 = vadd.f32 %v603_v17, %v563_v16 }
  0xd2   : > { %v328_v19 = vpop.f32.mrf.mxu0 }
  0xd3   : > { %v329_v20 = vadd.f32 %v563_v16, %v328_v19  ;;  %v358_v22 = vmax.f32 %v334_v18, 0.0 }
  0xd4   : > { %v606_v21 = vpop.f32.mrf.mxu0 }
  0xd5   : > { %v357_v23 = vmax.f32 %v329_v20, 0.0  ;;  %v344_v24 = vadd.f32 %v606_v21, %v563_v16 }
  0xd6   : > { %v338_v25 = vpop.f32.mrf.mxu0 }
  0xd7   : > { %v363_v26 = vpack.c.bf16 %v358_v22, %v357_v23  ;;  %v339_v27 = vadd.f32 %v563_v16, %v338_v25  ;;  %v360_v29 = vmax.f32 %v344_v24, 0.0 }
  0xd8   : > { %v609_v28 = vpop.f32.mrf.mxu0 }
  0xd9   : > { %v359_v30 = vmax.f32 %v339_v27, 0.0  ;;  %627 = vmatmul.mubr.bf16.vlgmr.msra.gmra.mxu0 %v363_v26  ;;  %v354_v33 = vadd.f32 %v609_v28, %v563_v16 }
  0xda   : > { %v348_v31 = vpop.f32.mrf.mxu0 }
  0xdb   : > { %v364_v32 = vpack.c.bf16 %v360_v29, %v359_v30  ;;  %v349_v34 = vadd.f32 %v563_v16, %v348_v31  ;;  %v362_v35 = vmax.f32 %v354_v33, 0.0 }
  0xdd   : > { %631 = vmatmul.mubr.bf16.vlgmr.msra.gmra.mxu1 %v364_v32  ;;  %v361_v36 = vmax.f32 %v349_v34, 0.0 }
  0xde   : > { %634 = vmatprep.mubr.msk.bf16.mxu1 %vm681_vm1, %v680_v2 }
  0xdf   : > { %v365_v37 = vpack.c.bf16 %v362_v35, %v361_v36 }
  0xe5   : > { %635 = vmatmul.mubr.bf16.gmra.mxu1 %v365_v37 }
 0x199   : > { %v471_v39 = vpop.f32.mrf.mxu0 }
 0x19a   : > { %v472_v40 = vadd.f32 %v570_v38, %v471_v39 }
 0x19b   : > { %v628_v41 = vpop.f32.mrf.mxu0 }
 0x19c   : > { %494 = vst [vmem:[%s226_s26] sm:$0xff] %v472_v40 }
 0x19d   : > { %v474_v42 = vpop.f32.mrf.mxu0  ;;  %v479_v43 = vpop.f32.mrf.mxu1 }
 0x19e   : > { %v475_v44 = vadd.f32 %v570_v38, %v474_v42  ;;  %v480_v45 = vadd.f32 %v570_v38, %v479_v43 }
 0x19f   : > { %v629_v46 = vpop.f32.mrf.mxu0  ;;  %v632_v47 = vpop.f32.mrf.mxu1 }
 0x1a0   : > { %495 = vst [vmem:[%s226_s26 + $0x8] sm:$0xff] %v475_v44  ;;  %496 = vst [vmem:[%s226_s26 + $0x10] sm:$0xff] %v480_v45 }
 0x1a1   : > { %v482_v48 = vpop.f32.mrf.mxu1 }
 0x1a2   : > { %v483_v49 = vadd.f32 %v570_v38, %v482_v48 }
 0x1a3   : > { %v633_v50 = vpop.f32.mrf.mxu1 }
 0x1a4   : > { %497 = vst [vmem:[%s226_s26 + $0x18] sm:$0xff] %v483_v49 }
 0x1a5   : > { %v487_v51 = vpop.f32.mrf.mxu1 }
 0x1a6   : > { %v488_v52 = vadd.f32 %v570_v38, %v487_v51 }
 0x1a7   : > { %v636_v53 = vpop.f32.mrf.mxu1 }
 0x1a8   : > { %498 = vst [vmem:[%s226_s26 + $0x20] sm:$0xff] %v488_v52 }
 0x1a9   : > { %v490_v54 = vpop.f32.mrf.mxu1 }
 0x1aa   : > { %v491_v55 = vadd.f32 %v570_v38, %v490_v54 }
 0x1ab   : > { %v637_v56 = vpop.f32.mrf.mxu1 }
 0x1ac   : > { %499 = vst [vmem:[%s226_s26 + $0x28] sm:$0xff] %v491_v55 }
 0x1ad PF: > { %s15_s18 = sadd.s32 1, %s678_s18  }
 0x1ae   : > { %p12_p4 = scmp.ge.s32.totalorder %s15_s18, 4  }
 0x1b0   :  { %14 = sbr.rel (!%p12_p4) target bundleno = 1 (0x1), region = 70 }

// kernel: subgraph_predictor_forward.9
= control target key start
LH: loop header
LB: loop body
LE: loop exit
PB: predicated region body
PF: predicated region fallthrough
CT: control target
= control target key end

     0   :  { %s1200_s24 = smov 0   ;;  %s1427_s0 = inlined_call_operand.vmem [shape: f32[96,128], index: 0, kind: input, shape index: {}]   ;;  %s1428_s1 = inlined_call_operand.vmem [shape: f32[96,128], index: 1, kind: input, shape index: {}]   ;;  %s1429_s2 = inlined_call_operand.vmem [shape: f32[96,128], index: 2, kind: input, shape index: {}]   ;;  %s1430_s3 = inlined_call_operand.vmem [shape: bf16[384,128], index: 3, kind: input, shape index: {}]   ;;  %s1431_s4 = inlined_call_operand.vmem [shape: f32[1,128], index: 4, kind: input, shape index: {}]   ;;  %s1432_s5 = inlined_call_operand.vmem [shape: bf16[128,128], index: 5, kind: input, shape index: {}]   ;;  %s1433_s6 = inlined_call_operand.vmem [shape: f32[1,128], index: 6, kind: input, shape index: {}]   ;;  %s1434_s7 = inlined_call_operand.vmem [shape: f32[96,128], index: 7, kind: output, shape index: {}]  }
   0x1 LB: > { %s935_s25 = sadd.s32 4294967295, %s1156_s24   ;;  %p939_p0 = scmp.ge.s32.totalorder %s1156_s24, 1  ;;  %s1156_s24 = sphi %s1200_s24, %s17_s24  }
   0x2   : > { %p260_p1 = scmp.lt.s32.totalorder %s1156_s24, 3 }
   0x4   : > { %p261_p2 = pnand %p939_p0, %p260_p1 }
   0x5   : > { %s302_s17 = smul.u32 (!%p261_p2), 6, %s935_s25 }
   0x6   : > { %264 = sbr.rel (%p261_p2) target bundleno = 472 (0x1d8), region = 48 }
   0x7   : > { %p303_p3 = scmp.lt.s32.totalorder (!%p261_p2), %s302_s17, 11  ;;  %s810_s20 = smul.u32 (!%p261_p2), 48, %s935_s25 }
   0xb   : > { %v1118_v0 = vld [vmem:[%s1430_s3 + $0x78] sm:$0xff]   ;;  %v1158_v1 = vmov 0.0   ;;  %v1121_v4 = vld [vmem:[%s1430_s3 + $0x70] sm:$0xff]   ;;  %vm1159_vm0 = vmmov 0   ;;  %v1124_v7 = vld [vmem:[%s1430_s3 + $0x68] sm:$0xff]   ;;  %s1436_s17 = smov (!%p303_p3, %s302_s17), 11 }
   0xc   : > { %1036 = vmatprep.subr.bf16.mxu1 %v1158_v1  ;;  %v1119_v2 = vld [vmem:[%s1430_s3 + $0x38] sm:$0xff]   ;;  %980 = vmatprep.subr.bf16.mxu0 %v1118_v0  ;;  %v1122_v5 = vld [vmem:[%s1430_s3 + $0x30] sm:$0xff]   ;;  %v1125_v8 = vld [vmem:[%s1430_s3 + $0x28] sm:$0xff]   ;;  %s1268_s18 = sshll.u32 %s1436_s17, 3 }
   0xd   : > { %v1120_v3 = vld [vmem:[%s1430_s3 + $0xb8] sm:$0xff]   ;;  %981 = vmatpush3.bf16.msra.mxu0 %v1119_v2  ;;  %1052 = vmatprep.mubr.msk.bf16.mxu1 %vm1159_vm0, %v1158_v1  ;;  %v1123_v6 = vld [vmem:[%s1430_s3 + $0xb0] sm:$0xff]   ;;  %v1126_v9 = vld [vmem:[%s1430_s3 + $0xa8] sm:$0xff]   ;;  %s1281_s17 = scalar_lea.vmem %s1428_s1, %s1268_s18  ;;  %s1298_s12 = scalar_lea.vmem %s1427_s0, %s1268_s18 }
   0xe   : > { %1037 = vmatpush3.bf16.msra.mxu1 %v1120_v3  ;;  %982 = vmatprep.subr.bf16.mxu0 %v1121_v4  ;;  %v1127_v10 = vld [vmem:[%s1430_s3 + $0x60] sm:$0xff]   ;;  %v1130_v13 = vld [vmem:[%s1430_s3 + $0x58] sm:$0xff]   ;;  %v1133_v16 = vld [vmem:[%s1430_s3 + $0x50] sm:$0xff]   ;;  %s1304_s15 = scalar_lea.vmem %s1429_s2, %s1268_s18  ;;  %s1410_s27 = scalar_lea.vmem %s1434_s7, %s1268_s18 }
   0xf   : > { %1038 = vmatprep.subr.bf16.mxu1 %v1158_v1  ;;  %v1128_v11 = vld [vmem:[%s1430_s3 + $0x20] sm:$0xff]   ;;  %v1131_v14 = vld [vmem:[%s1430_s3 + $0x18] sm:$0xff]   ;;  %v1134_v17 = vld [vmem:[%s1430_s3 + $0x10] sm:$0xff]  }
  0x10   : > { %v1129_v12 = vld [vmem:[%s1430_s3 + $0xa0] sm:$0xff]   ;;  %v1132_v15 = vld [vmem:[%s1430_s3 + $0x98] sm:$0xff]   ;;  %v1135_v18 = vld [vmem:[%s1430_s3 + $0x90] sm:$0xff]  }
  0x11   : > { %983 = vmatpush3.bf16.msra.mxu0 %v1122_v5  ;;  %v1136_v19 = vld [vmem:[%s1430_s3 + $0x48] sm:$0xff]   ;;  %v1139_v22 = vld [vmem:[%s1430_s3 + $0x40] sm:$0xff]   ;;  %v335_v32 = vld [vmem:[%s1281_s17 + $0x10] sm:$0xff] }
  0x12   : > { %1039 = vmatpush3.bf16.msra.mxu1 %v1123_v6  ;;  %984 = vmatprep.subr.bf16.mxu0 %v1124_v7  ;;  %v1137_v20 = vld [vmem:[%s1430_s3 + $0x8] sm:$0xff]   ;;  %v333_v23 = vld [vmem:[%s1281_s17] sm:$0xff]  ;;  %v336_v33 = vld [vmem:[%s1281_s17 + $0x18] sm:$0xff] }
  0x13   : > { %1040 = vmatprep.subr.bf16.mxu1 %v1158_v1  ;;  %v1138_v21 = vld [vmem:[%s1430_s3 + $0x88] sm:$0xff]   ;;  %v1140_v26 = vld [vmem:[%s1430_s3] sm:$0xff]   ;;  %v349_v36 = vpack.c.bf16 %v336_v33, %v335_v32  ;;  %v1142_v37 = vld [vmem:[%s1432_s5 + $0x38] sm:$0xff]  }
  0x14   : > { %v334_v24 = vld [vmem:[%s1281_s17 + $0x8] sm:$0xff]  ;;  %v1141_v27 = vld [vmem:[%s1430_s3 + $0x80] sm:$0xff]   ;;  %v329_v38 = vld [vmem:[%s1298_s12 + $0x10] sm:$0xff] }
  0x15   : > { %985 = vmatpush3.bf16.msra.mxu0 %v1125_v8  ;;  %v348_v25 = vpack.c.bf16 %v334_v24, %v333_v23  ;;  %v327_v28 = vld [vmem:[%s1298_s12] sm:$0xff]  ;;  %v328_v29 = vld [vmem:[%s1298_s12 + $0x8] sm:$0xff]  ;;  %v330_v39 = vld [vmem:[%s1298_s12 + $0x18] sm:$0xff] }
  0x16   : > { %1041 = vmatpush3.bf16.msra.mxu1 %v1126_v9  ;;  %986 = vmatprep.subr.bf16.mxu0 %v1127_v10  ;;  %v1316_v30 = vld [vmem:[%s1304_s15] sm:$0xff]  ;;  %v1319_v31 = vld [vmem:[%s1304_s15 + $0x8] sm:$0xff]  ;;  %v345_v34 = vpack.c.bf16 %v328_v29, %v327_v28  ;;  %v1334_v40 = vld [vmem:[%s1304_s15 + $0x10] sm:$0xff]  ;;  %v346_v45 = vpack.c.bf16 %v330_v39, %v329_v38 }
  0x17   : > { %1042 = vmatprep.subr.bf16.mxu1 %v1158_v1  ;;  %585 = vmatprep.mubr.bf16.mxu0 %v348_v25  ;;  %v351_v35 = vpack.c.bf16 %v1319_v31, %v1316_v30  ;;  %v1337_v41 = vld [vmem:[%s1304_s15 + $0x18] sm:$0xff]  ;;  %v337_v42 = vld [vmem:[%s1281_s17 + $0x20] sm:$0xff]  ;;  %v338_v43 = vld [vmem:[%s1281_s17 + $0x28] sm:$0xff] }
  0x18   : > { %v1143_v44 = vld [vmem:[%s1432_s5 + $0x30] sm:$0xff]   ;;  %v352_v46 = vpack.c.bf16 %v1337_v41, %v1334_v40  ;;  %v350_v47 = vpack.c.bf16 %v338_v43, %v337_v42  ;;  %v1144_v48 = vld [vmem:[%s1432_s5 + $0x28] sm:$0xff]   ;;  %v331_v49 = vld [vmem:[%s1298_s12 + $0x20] sm:$0xff] }
  0x19   : > { %987 = vmatpush3.bf16.msra.mxu0 %v1128_v11  ;;  %v332_v50 = vld [vmem:[%s1298_s12 + $0x28] sm:$0xff]  ;;  %v1360_v51 = vld [vmem:[%s1304_s15 + $0x20] sm:$0xff]  ;;  %v1146_v56 = vld [vmem:[%s1432_s5 + $0x18] sm:$0xff]  }
  0x1a   : > { %1043 = vmatpush3.bf16.msra.mxu1 %v1129_v12  ;;  %988 = vmatprep.subr.bf16.mxu0 %v1130_v13  ;;  %v1363_v52 = vld [vmem:[%s1304_s15 + $0x28] sm:$0xff]  ;;  %v1145_v53 = vld [vmem:[%s1432_s5 + $0x20] sm:$0xff]   ;;  %v347_v54 = vpack.c.bf16 %v332_v50, %v331_v49  ;;  %v1147_v57 = vld [vmem:[%s1432_s5 + $0x10] sm:$0xff]  }
  0x1b   : > { %1044 = vmatprep.subr.bf16.mxu1 %v1158_v1  ;;  %v353_v55 = vpack.c.bf16 %v1363_v52, %v1360_v51  ;;  %v1148_v58 = vld [vmem:[%s1432_s5 + $0x8] sm:$0xff]   ;;  %v1149_v59 = vld [vmem:[%s1432_s5] sm:$0xff]  }
  0x1c   : > { %v944_v62 = vld [vmem:[%s1431_s4] ss:$0 sm:$0xff] }
  0x1d   : > { %989 = vmatpush3.bf16.msra.mxu0 %v1131_v14 }
  0x1e   : > { %1045 = vmatpush3.bf16.msra.mxu1 %v1132_v15  ;;  %990 = vmatprep.subr.bf16.mxu0 %v1133_v16 }
  0x1f   : > { %1046 = vmatprep.subr.bf16.mxu1 %v1158_v1 }
  0x21   : > { %991 = vmatpush3.bf16.msra.mxu0 %v1134_v17 }
  0x22   : > { %1047 = vmatpush3.bf16.msra.mxu1 %v1135_v18  ;;  %992 = vmatprep.subr.bf16.mxu0 %v1136_v19 }
  0x23   : > { %1048 = vmatprep.subr.bf16.mxu1 %v1158_v1 }
  0x25   : > { %993 = vmatpush3.bf16.msra.mxu0 %v1137_v20 }
  0x26   : > { %1049 = vmatpush3.bf16.msra.mxu1 %v1138_v21  ;;  %994 = vmatprep.subr.bf16.mxu0 %v1139_v22 }
  0x27   : > { %1050 = vmatprep.subr.bf16.mxu1 %v1158_v1 }
  0x29   : > { %995 = vmatpush3.bf16.msra.mxu0 %v1140_v26 }
  0x2a   : > { %1051 = vmatpush3.bf16.msra.mxu1 %v1141_v27  ;;  %1064 = vmatprep.subr.bf16.mxu0 %v1158_v1 }
  0x2b   : > { %1092 = vmatprep.subr.bf16.mxu1 %v1158_v1 }
  0x2c   : > { %586 = vmatmul.mubr.bf16.vlgmr.msra.gmra.mxu0 %v345_v34 }
  0x2d   : > { %1053 = vmatmul.mubr.bf16.vlgmr.msra.gmra.mxu1 %v351_v35  ;;  %593 = vmatprep.mubr.bf16.mxu0 %v349_v36 }
  0x2e   : > { %1056 = vmatprep.mubr.msk.bf16.mxu1 %vm1159_vm0, %v1158_v1  ;;  %1065 = vmatpush3.bf16.msra.mxu0 %v1142_v37 }
  0x2f   : > { %1066 = vmatprep.subr.bf16.mxu0 %v1158_v1  ;;  %1100 = vmatpush3.bf16.msra.mxu1 %v1142_v37 }
  0x30   : > { %1093 = vmatprep.subr.bf16.mxu1 %v1158_v1 }
  0x32   : > { %1067 = vmatpush3.bf16.msra.mxu0 %v1143_v44 }
  0x33   : > { %1068 = vmatprep.subr.bf16.mxu0 %v1158_v1  ;;  %1101 = vmatpush3.bf16.msra.mxu1 %v1143_v44 }
  0x34   : > { %594 = vmatmul.mubr.bf16.gmra.mxu0 %v346_v45  ;;  %1094 = vmatprep.subr.bf16.mxu1 %v1158_v1 }
  0x35   : > { %1057 = vmatmul.mubr.bf16.gmra.mxu1 %v352_v46  ;;  %601 = vmatprep.mubr.bf16.mxu0 %v350_v47 }
  0x36   : > { %1060 = vmatprep.mubr.msk.bf16.mxu1 %vm1159_vm0, %v1158_v1  ;;  %1069 = vmatpush3.bf16.msra.mxu0 %v1144_v48 }
  0x37   : > { %1070 = vmatprep.subr.bf16.mxu0 %v1158_v1  ;;  %1102 = vmatpush3.bf16.msra.mxu1 %v1144_v48 }
  0x38   : > { %1095 = vmatprep.subr.bf16.mxu1 %v1158_v1 }
  0x3a   : > { %1071 = vmatpush3.bf16.msra.mxu0 %v1145_v53 }
  0x3b   : > { %1072 = vmatprep.subr.bf16.mxu0 %v1158_v1  ;;  %1103 = vmatpush3.bf16.msra.mxu1 %v1145_v53 }
  0x3c   : > { %602 = vmatmul.mubr.bf16.gmra.mxu0 %v347_v54  ;;  %1096 = vmatprep.subr.bf16.mxu1 %v1158_v1 }
  0x3d   : > { %1061 = vmatmul.mubr.bf16.gmra.mxu1 %v353_v55  ;;  %1080 = vmatprep.mubr.msk.bf16.mxu0 %vm1159_vm0, %v1158_v1  ;;  %v811_v55 = vlaneseq }
  0x3e   : > { %1084 = vmatprep.mubr.msk.bf16.mxu1 %vm1159_vm0, %v1158_v1  ;;  %1073 = vmatpush3.bf16.msra.mxu0 %v1146_v56 }
  0x3f   : > { %1104 = vmatpush3.bf16.msra.mxu1 %v1146_v56  ;;  %1074 = vmatprep.subr.bf16.mxu0 %v1158_v1  ;;  %v812_v56 = vshrl.u32 %v811_v55, 7 }
  0x40   : > { %1097 = vmatprep.subr.bf16.mxu1 %v1158_v1 }
  0x42   : > { %1075 = vmatpush3.bf16.msra.mxu0 %v1147_v57 }
  0x43   : > { %1105 = vmatpush3.bf16.msra.mxu1 %v1147_v57  ;;  %1076 = vmatprep.subr.bf16.mxu0 %v1158_v1  ;;  %v818_v57 = vstv %s810_s20 }
  0x44   : > { %1098 = vmatprep.subr.bf16.mxu1 %v1158_v1 }
  0x46   : > { %1077 = vmatpush3.bf16.msra.mxu0 %v1148_v58 }
  0x47   : > { %1106 = vmatpush3.bf16.msra.mxu1 %v1148_v58  ;;  %1078 = vmatprep.subr.bf16.mxu0 %v1158_v1  ;;  %v969_v58 = vld [vmem:[%s1433_s6] ss:$0 sm:$0xff] }
  0x48   : > { %1099 = vmatprep.subr.bf16.mxu1 %v1158_v1 }
  0x4a   : > { %1079 = vmatpush3.bf16.msra.mxu0 %v1149_v59 }
  0x4b   : > { %1107 = vmatpush3.bf16.msra.mxu1 %v1149_v59  ;;  %v819_v59 = vadd.s32 %v818_v57, %v812_v56 }
  0x4d   : > { %vm825_vm1 = vcmp.lt.s32.totalorder %v819_v59, 66 }
  0xec   : > { %v996_v60 = vpop.f32.mrf.mxu0 }
  0xed   : > { %v644_v61 = vpop.f32.mrf.mxu1 }
  0xee   : > { %v997_v63 = vpop.f32.mrf.mxu0 }
  0xef   : > { %v998_v0 = vadd.f32 %v997_v63, %v996_v60  ;;  %v1054_v2 = vpop.f32.mrf.mxu1  ;;  %v813_v60 = vadd.s32 8, %v812_v56 }
  0xf0   : > { %v999_v3 = vpop.f32.mrf.mxu0 }
  0xf1   : > { %v588_v4 = vadd.f32 %v998_v0, %v944_v62  ;;  %v647_v5 = vpop.f32.mrf.mxu1  ;;  %v820_v63 = vadd.s32 %v818_v57, %v813_v60  ;;  %v814_v0 = vadd.s32 16, %v812_v56 }
  0xf2   : > { %v1000_v6 = vpop.f32.mrf.mxu0 }
  0xf3   : > { %v1001_v7 = vadd.f32 %v1000_v6, %v999_v3  ;;  %v1055_v8 = vpop.f32.mrf.mxu1  ;;  %v645_v10 = vadd.f32 %v644_v61, %v588_v4  ;;  %vm826_vm2 = vcmp.lt.s32.totalorder %v820_v63, 66 }
  0xf4   : > { %v1002_v9 = vpop.f32.mrf.mxu0  ;;  %v815_v8 = vadd.s32 24, %v812_v56 }
  0xf5   : > { %v591_v11 = vadd.f32 %v1001_v7, %v944_v62  ;;  %v652_v12 = vpop.f32.mrf.mxu1  ;;  %v667_v18 = vmax.f32 %v645_v10, 0.0  ;;  %v821_v7 = vadd.s32 %v818_v57, %v814_v0 }
  0xf6   : > { %v1003_v13 = vpop.f32.mrf.mxu0 }
  0xf7   : > { %v648_v14 = vadd.f32 %v647_v5, %v591_v11  ;;  %v1004_v15 = vadd.f32 %v1003_v13, %v1002_v9  ;;  %v1058_v16 = vpop.f32.mrf.mxu1  ;;  %vm827_vm3 = vcmp.lt.s32.totalorder %v821_v7, 66 }
  0xf8   : > { %v1005_v17 = vpop.f32.mrf.mxu0 }
  0xf9   : > { %v668_v19 = vmax.f32 %v648_v14, 0.0  ;;  %v596_v20 = vadd.f32 %v1004_v15, %v944_v62  ;;  %v655_v21 = vpop.f32.mrf.mxu1  ;;  %v822_v14 = vadd.s32 %v818_v57, %v815_v8 }
  0xfa   : > { %v1006_v22 = vpop.f32.mrf.mxu0 }
  0xfb   : > { %v673_v23 = vpack.c.bf16 %v668_v19, %v667_v18  ;;  %v1007_v24 = vadd.f32 %v1006_v22, %v1005_v17  ;;  %v1059_v25 = vpop.f32.mrf.mxu1  ;;  %v653_v27 = vadd.f32 %v652_v12, %v596_v20  ;;  %vm828_vm4 = vcmp.lt.s32.totalorder %v822_v14, 66 }
  0xfc   : > { %v1008_v26 = vpop.f32.mrf.mxu0 }
  0xfd   : > { %v599_v28 = vadd.f32 %v1007_v24, %v944_v62  ;;  %v660_v29 = vpop.f32.mrf.mxu1  ;;  %1081 = vmatmul.mubr.bf16.vlgmr.msra.gmra.mxu0 %v673_v23  ;;  %v669_v37 = vmax.f32 %v653_v27, 0.0 }
  0xfe   : > { %v1009_v32 = vpop.f32.mrf.mxu0 }
  0xff   : > { %v656_v33 = vadd.f32 %v655_v21, %v599_v28  ;;  %v1010_v34 = vadd.f32 %v1009_v32, %v1008_v26  ;;  %v1062_v35 = vpop.f32.mrf.mxu1 }
 0x100   : > { %v1011_v36 = vpop.f32.mrf.mxu0 }
 0x101   : > { %v670_v38 = vmax.f32 %v656_v33, 0.0  ;;  %v604_v39 = vadd.f32 %v1010_v34, %v944_v62  ;;  %v663_v42 = vpop.f32.mrf.mxu1 }
 0x102   : > { %v1012_v43 = vpop.f32.mrf.mxu0 }
 0x103   : > { %v674_v44 = vpack.c.bf16 %v670_v38, %v669_v37  ;;  %v1013_v45 = vadd.f32 %v1012_v43, %v1011_v36  ;;  %v1063_v46 = vpop.f32.mrf.mxu1  ;;  %v661_v47 = vadd.f32 %v660_v29, %v604_v39 }
 0x105   : > { %v607_v48 = vadd.f32 %v1013_v45, %v944_v62  ;;  %1085 = vmatmul.mubr.bf16.vlgmr.msra.gmra.mxu1 %v674_v44  ;;  %v671_v50 = vmax.f32 %v661_v47, 0.0 }
 0x106   : > { %1088 = vmatprep.mubr.msk.bf16.mxu1 %vm1159_vm0, %v1158_v1 }
 0x107   : > { %v664_v49 = vadd.f32 %v663_v42, %v607_v48 }
 0x109   : > { %v672_v53 = vmax.f32 %v664_v49, 0.0 }
 0x10b   : > { %v675_v54 = vpack.c.bf16 %v672_v53, %v671_v50 }
 0x10d   : > { %1089 = vmatmul.mubr.bf16.gmra.mxu1 %v675_v54 }
 0x1bd   : > { %v781_v61 = vpop.f32.mrf.mxu0 }
 0x1be   : > { %v782_v62 = vadd.f32 %v969_v58, %v781_v61 }
 0x1bf   : > { %v1082_v1 = vpop.f32.mrf.mxu0 }
 0x1c0   : > { %v804_v2 = vadd.f32 %v782_v62, %v1316_v30  ;;  %v816_v30 = vadd.s32 32, %v812_v56 }
 0x1c1   : > { %v784_v3 = vpop.f32.mrf.mxu0 }
 0x1c2   : > { %v843_v4 = vsel %vm825_vm1, %v804_v2, 0.0  ;;  %v785_v5 = vadd.f32 %v969_v58, %v784_v3  ;;  %v823_v20 = vadd.s32 %v818_v57, %v816_v30 }
 0x1c3   : > { %849 = vst [vmem:[%s1410_s27] sm:$0xff] %v843_v4  ;;  %v1083_v6 = vpop.f32.mrf.mxu0 }
 0x1c4   : > { %v805_v9 = vadd.f32 %v785_v5, %v1319_v31  ;;  %v817_v31 = vadd.s32 40, %v812_v56  ;;  %vm829_vm5 = vcmp.lt.s32.totalorder %v823_v20, 66 }
 0x1c5   : > { %v789_v10 = vpop.f32.mrf.mxu1 }
 0x1c6   : > { %v844_v11 = vsel %vm826_vm2, %v805_v9, 0.0  ;;  %v790_v12 = vadd.f32 %v969_v58, %v789_v10  ;;  %v824_v26 = vadd.s32 %v818_v57, %v817_v31 }
 0x1c7   : > { %850 = vst [vmem:[%s1410_s27 + $0x8] sm:$0xff] %v844_v11  ;;  %v1086_v13 = vpop.f32.mrf.mxu1 }
 0x1c8   : > { %v806_v15 = vadd.f32 %v790_v12, %v1334_v40  ;;  %vm830_vm6 = vcmp.lt.s32.totalorder %v824_v26, 66 }
 0x1c9   : > { %v792_v16 = vpop.f32.mrf.mxu1 }
 0x1ca   : > { %v845_v17 = vsel %vm827_vm3, %v806_v15, 0.0  ;;  %v793_v18 = vadd.f32 %v969_v58, %v792_v16 }
 0x1cb   : > { %851 = vst [vmem:[%s1410_s27 + $0x10] sm:$0xff] %v845_v17  ;;  %v1087_v19 = vpop.f32.mrf.mxu1 }
 0x1cc   : > { %v807_v21 = vadd.f32 %v793_v18, %v1337_v41 }
 0x1cd   : > { %v797_v22 = vpop.f32.mrf.mxu1 }
 0x1ce   : > { %v846_v23 = vsel %vm828_vm4, %v807_v21, 0.0  ;;  %v798_v24 = vadd.f32 %v969_v58, %v797_v22 }
 0x1cf   : > { %852 = vst [vmem:[%s1410_s27 + $0x18] sm:$0xff] %v846_v23  ;;  %v1090_v25 = vpop.f32.mrf.mxu1 }
 0x1d0   : > { %v808_v40 = vadd.f32 %v798_v24, %v1360_v51 }
 0x1d1   : > { %v800_v27 = vpop.f32.mrf.mxu1 }
 0x1d2   : > { %v847_v28 = vsel %vm829_vm5, %v808_v40, 0.0  ;;  %v801_v29 = vadd.f32 %v969_v58, %v800_v27 }
 0x1d3   : > { %853 = vst [vmem:[%s1410_s27 + $0x20] sm:$0xff] %v847_v28  ;;  %v1091_v32 = vpop.f32.mrf.mxu1 }
 0x1d4   : > { %v809_v33 = vadd.f32 %v801_v29, %v1363_v52 }
 0x1d6   : > { %v848_v34 = vsel %vm830_vm6, %v809_v33, 0.0 }
 0x1d7   : > { %854 = vst [vmem:[%s1410_s27 + $0x28] sm:$0xff] %v848_v34 }
 0x1d8 PF: > { %s17_s24 = sadd.s32 1, %s1156_s24  }
 0x1d9   : > { %p14_p4 = scmp.ge.s32.totalorder %s17_s24, 4  }
 0x1db   :  { %16 = sbr.rel (!%p14_p4) target bundleno = 1 (0x1), region = 84 }

// kernel: subgraph_predictor_forward.13
= control target key start
LH: loop header
LB: loop body
LE: loop exit
PB: predicated region body
PF: predicated region fallthrough
CT: control target
= control target key end

     0   :  { %v351_v0 = vmov 0.0   ;;  %vm352_vm0 = vmmov 0   ;;  %s449_s1 = inlined_call_operand.vmem [shape: bf16[128,128], index: 1, kind: input, shape index: {}]   ;;  %s450_s3 = inlined_call_operand.vmem [shape: bf16[128,128], index: 3, kind: input, shape index: {}]   ;;  %s451_s0 = inlined_call_operand.vmem [shape: f32[16,128], index: 0, kind: input, shape index: {}]   ;;  %s452_s2 = inlined_call_operand.vmem [shape: f32[1,128], index: 2, kind: input, shape index: {}]   ;;  %s453_s4 = inlined_call_operand.vmem [shape: f32[1,128], index: 4, kind: input, shape index: {}]   ;;  %s454_s5 = inlined_call_operand.vmem [shape: f32[16,128], index: 5, kind: output, shape index: {}]  }
   0x1   :  { %293 = vmatprep.subr.bf16.mxu0 %v351_v0  ;;  %v335_v1 = vld [vmem:[%s449_s1 + $0x38] sm:$0xff]   ;;  %309 = vmatprep.mubr.msk.bf16.mxu0 %vm352_vm0, %v351_v0  ;;  %v336_v2 = vld [vmem:[%s449_s1 + $0x30] sm:$0xff]   ;;  %v337_v3 = vld [vmem:[%s449_s1 + $0x28] sm:$0xff]  }
   0x2   :  { %313 = vmatprep.subr.bf16.mxu1 %v351_v0  ;;  %329 = vmatprep.mubr.msk.bf16.mxu1 %vm352_vm0, %v351_v0  ;;  %v343_v4 = vld [vmem:[%s450_s3 + $0x38] sm:$0xff]   ;;  %v338_v5 = vld [vmem:[%s449_s1 + $0x20] sm:$0xff]   ;;  %v344_v6 = vld [vmem:[%s450_s3 + $0x30] sm:$0xff]  }
   0x3   :  { %294 = vmatpush3.bf16.msra.mxu0 %v335_v1  ;;  %314 = vmatpush3.bf16.msra.mxu1 %v343_v4  ;;  %v339_v7 = vld [vmem:[%s449_s1 + $0x18] sm:$0xff]   ;;  %v345_v8 = vld [vmem:[%s450_s3 + $0x28] sm:$0xff]   ;;  %v340_v9 = vld [vmem:[%s449_s1 + $0x10] sm:$0xff]  }
   0x4   :  { %295 = vmatprep.subr.bf16.mxu0 %v351_v0  ;;  %315 = vmatprep.subr.bf16.mxu1 %v351_v0  ;;  %v346_v10 = vld [vmem:[%s450_s3 + $0x20] sm:$0xff]   ;;  %v341_v11 = vld [vmem:[%s449_s1 + $0x8] sm:$0xff]   ;;  %v347_v12 = vld [vmem:[%s450_s3 + $0x18] sm:$0xff]  }
   0x5   :  { %v342_v13 = vld [vmem:[%s449_s1] sm:$0xff]   ;;  %v22_v15 = vld [vmem:[%s451_s0 + $0x8] sm:$0xff]  ;;  %v348_v17 = vld [vmem:[%s450_s3 + $0x10] sm:$0xff]  }
   0x6   :  { %v21_v14 = vld [vmem:[%s451_s0] sm:$0xff]  ;;  %v349_v18 = vld [vmem:[%s450_s3 + $0x8] sm:$0xff]  }
   0x7   :  { %296 = vmatpush3.bf16.msra.mxu0 %v336_v2  ;;  %316 = vmatpush3.bf16.msra.mxu1 %v344_v6  ;;  %v23_v16 = vpack.c.bf16 %v22_v15, %v21_v14  ;;  %v350_v19 = vld [vmem:[%s450_s3] sm:$0xff]  }
   0x8   :  { %297 = vmatprep.subr.bf16.mxu0 %v351_v0  ;;  %317 = vmatprep.subr.bf16.mxu1 %v351_v0  ;;  %v257_v20 = vld [vmem:[%s452_s2] ss:$0 sm:$0xff] }
   0x9   :  { %v266_v30 = vld [vmem:[%s453_s4] ss:$0 sm:$0xff] }
   0xb   :  { %298 = vmatpush3.bf16.msra.mxu0 %v337_v3  ;;  %318 = vmatpush3.bf16.msra.mxu1 %v345_v8 }
   0xc   :  { %299 = vmatprep.subr.bf16.mxu0 %v351_v0  ;;  %319 = vmatprep.subr.bf16.mxu1 %v351_v0 }
   0xf   :  { %300 = vmatpush3.bf16.msra.mxu0 %v338_v5  ;;  %320 = vmatpush3.bf16.msra.mxu1 %v346_v10 }
  0x10   :  { %301 = vmatprep.subr.bf16.mxu0 %v351_v0  ;;  %321 = vmatprep.subr.bf16.mxu1 %v351_v0 }
  0x13   :  { %302 = vmatpush3.bf16.msra.mxu0 %v339_v7  ;;  %322 = vmatpush3.bf16.msra.mxu1 %v347_v12 }
  0x14   :  { %303 = vmatprep.subr.bf16.mxu0 %v351_v0  ;;  %323 = vmatprep.subr.bf16.mxu1 %v351_v0 }
  0x17   :  { %304 = vmatpush3.bf16.msra.mxu0 %v340_v9  ;;  %324 = vmatpush3.bf16.msra.mxu1 %v348_v17 }
  0x18   :  { %305 = vmatprep.subr.bf16.mxu0 %v351_v0  ;;  %325 = vmatprep.subr.bf16.mxu1 %v351_v0 }
  0x1b   :  { %306 = vmatpush3.bf16.msra.mxu0 %v341_v11  ;;  %326 = vmatpush3.bf16.msra.mxu1 %v349_v18 }
  0x1c   :  { %307 = vmatprep.subr.bf16.mxu0 %v351_v0  ;;  %327 = vmatprep.subr.bf16.mxu1 %v351_v0 }
  0x1f   :  { %308 = vmatpush3.bf16.msra.mxu0 %v342_v13  ;;  %328 = vmatpush3.bf16.msra.mxu1 %v350_v19 }
  0x22   :  { %310 = vmatmul.mubr.bf16.vlgmr.msra.gmra.mxu0 %v23_v16 }
  0xe2   :  { %v129_v21 = vpop.f32.mrf.mxu0 }
  0xe3   :  { %v130_v23 = vadd.f32 %v257_v20, %v129_v21 }
  0xe4   :  { %v311_v22 = vpop.f32.mrf.mxu0 }
  0xe5   :  { %v136_v27 = vmax.f32 %v130_v23, 0.0 }
  0xe6   :  { %v132_v24 = vpop.f32.mrf.mxu0 }
  0xe7   :  { %v133_v25 = vadd.f32 %v257_v20, %v132_v24 }
  0xe8   :  { %v312_v26 = vpop.f32.mrf.mxu0 }
  0xe9   :  { %v137_v28 = vmax.f32 %v133_v25, 0.0 }
  0xeb   :  { %v138_v29 = vpack.c.bf16 %v137_v28, %v136_v27 }
  0xed   :  { %330 = vmatmul.mubr.bf16.vlgmr.msra.gmra.mxu1 %v138_v29 }
 0x1ad   :  { %v244_v31 = vpop.f32.mrf.mxu1 }
 0x1ae   :  { %v245_v32 = vadd.f32 %v266_v30, %v244_v31 }
 0x1af   :  { %v331_v33 = vpop.f32.mrf.mxu1 }
 0x1b0   :  { %251 = vst [vmem:[%s454_s5] sm:$0xff] %v245_v32 }
 0x1b1   :  { %v247_v34 = vpop.f32.mrf.mxu1 }
 0x1b2   :  { %v248_v35 = vadd.f32 %v266_v30, %v247_v34 }
 0x1b3   :  { %v332_v36 = vpop.f32.mrf.mxu1 }
 0x1b4   :  { %252 = vst [vmem:[%s454_s5 + $0x8] sm:$0xff] %v248_v35 }

// kernel: subgraph_predictor_forward.10
= control target key start
LH: loop header
LB: loop body
LE: loop exit
PB: predicated region body
PF: predicated region fallthrough
CT: control target
= control target key end

     0   :  { %v432_v1 = vmov 0.0   ;;  %vm433_vm0 = vmmov 0   ;;  %s574_s2 = inlined_call_operand.vmem [shape: bf16[256,128], index: 2, kind: input, shape index: {}]   ;;  %s575_s1 = inlined_call_operand.vmem [shape: f32[16,128], index: 1, kind: input, shape index: {}]   ;;  %s576_s4 = inlined_call_operand.vmem [shape: bf16[128,128], index: 4, kind: input, shape index: {}]   ;;  %s577_s0 = inlined_call_operand.vmem [shape: f32[16,128], index: 0, kind: input, shape index: {}]   ;;  %s578_s3 = inlined_call_operand.vmem [shape: f32[1,128], index: 3, kind: input, shape index: {}]   ;;  %s579_s5 = inlined_call_operand.vmem [shape: f32[1,128], index: 5, kind: input, shape index: {}]   ;;  %s580_s6 = inlined_call_operand.vmem [shape: f32[16,128], index: 6, kind: output, shape index: {}]  }
   0x1   :  { %v408_v0 = vld [vmem:[%s574_s2 + $0x78] sm:$0xff]   ;;  %386 = vmatprep.subr.bf16.mxu1 %v432_v1  ;;  %v410_v3 = vld [vmem:[%s574_s2 + $0x70] sm:$0xff]   ;;  %v412_v5 = vld [vmem:[%s574_s2 + $0x68] sm:$0xff]   ;;  %402 = vmatprep.mubr.msk.bf16.mxu1 %vm433_vm0, %v432_v1 }
   0x2   :  { %v409_v2 = vld [vmem:[%s574_s2 + $0x38] sm:$0xff]   ;;  %355 = vmatprep.subr.bf16.mxu0 %v408_v0  ;;  %v411_v4 = vld [vmem:[%s574_s2 + $0x30] sm:$0xff]   ;;  %v413_v6 = vld [vmem:[%s574_s2 + $0x28] sm:$0xff]  }
   0x3   :  { %356 = vmatpush3.bf16.msra.mxu0 %v409_v2  ;;  %v414_v7 = vld [vmem:[%s574_s2 + $0x60] sm:$0xff]   ;;  %v416_v9 = vld [vmem:[%s574_s2 + $0x58] sm:$0xff]   ;;  %v418_v11 = vld [vmem:[%s574_s2 + $0x50] sm:$0xff]  }
   0x4   :  { %357 = vmatprep.subr.bf16.mxu0 %v410_v3  ;;  %v415_v8 = vld [vmem:[%s574_s2 + $0x20] sm:$0xff]   ;;  %v417_v10 = vld [vmem:[%s574_s2 + $0x18] sm:$0xff]   ;;  %v27_v13 = vld [vmem:[%s575_s1 + $0x8] sm:$0xff] }
   0x5   :  { %v26_v12 = vld [vmem:[%s575_s1] sm:$0xff]  ;;  %v419_v14 = vld [vmem:[%s574_s2 + $0x10] sm:$0xff]   ;;  %v424_v16 = vld [vmem:[%s576_s4 + $0x38] sm:$0xff]  }
   0x6   :  { %v29_v15 = vpack.c.bf16 %v27_v13, %v26_v12  ;;  %v420_v17 = vld [vmem:[%s574_s2 + $0x48] sm:$0xff]   ;;  %387 = vmatpush3.bf16.msra.mxu1 %v424_v16  ;;  %v425_v18 = vld [vmem:[%s576_s4 + $0x30] sm:$0xff]   ;;  %v422_v20 = vld [vmem:[%s574_s2 + $0x40] sm:$0xff]  }
   0x7   :  { %358 = vmatpush3.bf16.msra.mxu0 %v411_v4  ;;  %v421_v19 = vld [vmem:[%s574_s2 + $0x8] sm:$0xff]   ;;  %388 = vmatprep.subr.bf16.mxu1 %v432_v1  ;;  %v423_v22 = vld [vmem:[%s574_s2] sm:$0xff]   ;;  %v428_v27 = vld [vmem:[%s576_s4 + $0x18] sm:$0xff]  }
   0x8   :  { %359 = vmatprep.subr.bf16.mxu0 %v412_v5  ;;  %197 = vmatprep.mubr.bf16.mxu0 %v29_v15  ;;  %v426_v21 = vld [vmem:[%s576_s4 + $0x28] sm:$0xff]   ;;  %v24_v23 = vld [vmem:[%s577_s0] sm:$0xff]  ;;  %v429_v28 = vld [vmem:[%s576_s4 + $0x10] sm:$0xff]  }
   0x9   :  { %v25_v24 = vld [vmem:[%s577_s0 + $0x8] sm:$0xff]  ;;  %v427_v25 = vld [vmem:[%s576_s4 + $0x20] sm:$0xff]  }
   0xa   :  { %389 = vmatpush3.bf16.msra.mxu1 %v425_v18  ;;  %v28_v26 = vpack.c.bf16 %v25_v24, %v24_v23  ;;  %v430_v29 = vld [vmem:[%s576_s4 + $0x8] sm:$0xff]   ;;  %v431_v30 = vld [vmem:[%s576_s4] sm:$0xff]  }
   0xb   :  { %360 = vmatpush3.bf16.msra.mxu0 %v413_v6  ;;  %390 = vmatprep.subr.bf16.mxu1 %v432_v1  ;;  %v329_v34 = vld [vmem:[%s578_s3] ss:$0 sm:$0xff] }
   0xc   :  { %361 = vmatprep.subr.bf16.mxu0 %v414_v7  ;;  %v346_v43 = vld [vmem:[%s579_s5] ss:$0 sm:$0xff] }
   0xe   :  { %391 = vmatpush3.bf16.msra.mxu1 %v426_v21 }
   0xf   :  { %362 = vmatpush3.bf16.msra.mxu0 %v415_v8  ;;  %392 = vmatprep.subr.bf16.mxu1 %v432_v1 }
  0x10   :  { %363 = vmatprep.subr.bf16.mxu0 %v416_v9 }
  0x12   :  { %393 = vmatpush3.bf16.msra.mxu1 %v427_v25 }
  0x13   :  { %364 = vmatpush3.bf16.msra.mxu0 %v417_v10  ;;  %394 = vmatprep.subr.bf16.mxu1 %v432_v1 }
  0x14   :  { %365 = vmatprep.subr.bf16.mxu0 %v418_v11 }
  0x16   :  { %395 = vmatpush3.bf16.msra.mxu1 %v428_v27 }
  0x17   :  { %366 = vmatpush3.bf16.msra.mxu0 %v419_v14  ;;  %396 = vmatprep.subr.bf16.mxu1 %v432_v1 }
  0x18   :  { %367 = vmatprep.subr.bf16.mxu0 %v420_v17 }
  0x1a   :  { %397 = vmatpush3.bf16.msra.mxu1 %v429_v28 }
  0x1b   :  { %368 = vmatpush3.bf16.msra.mxu0 %v421_v19  ;;  %398 = vmatprep.subr.bf16.mxu1 %v432_v1 }
  0x1c   :  { %369 = vmatprep.subr.bf16.mxu0 %v422_v20 }
  0x1e   :  { %399 = vmatpush3.bf16.msra.mxu1 %v430_v29 }
  0x1f   :  { %370 = vmatpush3.bf16.msra.mxu0 %v423_v22  ;;  %400 = vmatprep.subr.bf16.mxu1 %v432_v1 }
  0x22   :  { %198 = vmatmul.mubr.bf16.vlgmr.msra.gmra.mxu0 %v28_v26  ;;  %401 = vmatpush3.bf16.msra.mxu1 %v431_v30 }
  0xe2   :  { %v371_v31 = vpop.f32.mrf.mxu0 }
  0xe4   :  { %v372_v32 = vpop.f32.mrf.mxu0 }
  0xe5   :  { %v373_v33 = vadd.f32 %v372_v32, %v371_v31 }
  0xe6   :  { %v374_v35 = vpop.f32.mrf.mxu0 }
  0xe7   :  { %v200_v37 = vadd.f32 %v373_v33, %v329_v34 }
  0xe8   :  { %v375_v36 = vpop.f32.mrf.mxu0 }
  0xe9   :  { %v376_v38 = vadd.f32 %v375_v36, %v374_v35  ;;  %v206_v40 = vmax.f32 %v200_v37, 0.0 }
  0xeb   :  { %v203_v39 = vadd.f32 %v376_v38, %v329_v34 }
  0xed   :  { %v207_v41 = vmax.f32 %v203_v39, 0.0 }
  0xef   :  { %v208_v42 = vpack.c.bf16 %v207_v41, %v206_v40 }
  0xf1   :  { %403 = vmatmul.mubr.bf16.vlgmr.msra.gmra.mxu1 %v208_v42 }
 0x1b1   :  { %v314_v44 = vpop.f32.mrf.mxu1 }
 0x1b2   :  { %v315_v45 = vadd.f32 %v346_v43, %v314_v44 }
 0x1b3   :  { %v404_v46 = vpop.f32.mrf.mxu1 }
 0x1b4   :  { %v321_v47 = vadd.f32 %v315_v45, %v24_v23 }
 0x1b5   :  { %v317_v48 = vpop.f32.mrf.mxu1 }
 0x1b6   :  { %323 = vst [vmem:[%s580_s6] sm:$0xff] %v321_v47  ;;  %v318_v49 = vadd.f32 %v346_v43, %v317_v48 }
 0x1b7   :  { %v405_v50 = vpop.f32.mrf.mxu1 }
 0x1b8   :  { %v322_v51 = vadd.f32 %v318_v49, %v25_v24 }
 0x1ba   :  { %324 = vst [vmem:[%s580_s6 + $0x8] sm:$0xff] %v322_v51 }

</bundles_post_ra>
